<compile_context>
chip_gen: v7x
topology: tpu7x:2x2x1
jax: 0.10.0
libtpu: 0.0.40
codegen_flags: <defaults>
</compile_context>

<pallas_src>
import jax
import jax.numpy as jnp
from jax.experimental import pallas as pl
from jax.experimental.pallas import tpu as pltpu


def _round_up(x, m):
    return (x + m - 1) // m * m


# 128-lane-aligned slab appended after the x block; its first row/column holds
# the folded bias (ones column in the operand, b_ih+b_hh row in the weights).
_BIAS_ROWS = 128


# ----------------------------- Pallas kernel ------------------------------ #
def _stacked_lstm_kernel(x_ref, h_ref, c_ref, w_ref, h_out_ref, c_out_ref,
                         zh_ref):
    """Whole stacked-LSTM step in one kernel invocation (grid=(1,)).

    x_ref:     (B_pad, d_xb)         [x | 0-pad | bias-ones col | 0-pad]
    h_ref:     (L, B_pad, H_pad)     incoming hidden states (all layers)
    c_ref:     (L, B_pad, H_pad)     incoming cell states (all layers)
    w_ref:     (L, K, 4*H_pad)       packed [W_ih ; b ; W_hh], K = d_xb + H_pad
    h_out_ref: (L, B_pad, H_pad)
    c_out_ref: (L, B_pad, H_pad)
    zh_ref:    VMEM scratch (B_pad, K) — fused matmul operand, reused per layer
    """
    num_layers, _, h_pad = h_ref.shape
    d_xb = x_ref.shape[1]

    # Stage the fused operand once (no per-layer concatenate copies).
    zh_ref[:, :d_xb] = x_ref[...]
    zh_ref[:, d_xb:] = h_ref[0]

    # num_layers is static -> this Python loop is fully unrolled at trace time
    # (equivalent to lax.fori_loop(..., unroll=True)) and every slice is static.
    for layer in range(num_layers):
        # Single fused MXU matmul per layer: [x_or_prev_h | 1 | h] @ [W_ih; b; W_hh].
        gates = jnp.dot(zh_ref[...], w_ref[layer],
                        preferred_element_type=jnp.float32)   # (B_pad, 4*H_pad)

        # Gate slices are 128-lane aligned (each gate occupies H_pad lanes).
        i_g = jax.nn.sigmoid(gates[:, 0 * h_pad:1 * h_pad])
        f_g = jax.nn.sigmoid(gates[:, 1 * h_pad:2 * h_pad])
        g_g = jnp.tanh(gates[:, 2 * h_pad:3 * h_pad])
        o_g = jax.nn.sigmoid(gates[:, 3 * h_pad:4 * h_pad])

        c_new = f_g * c_ref[layer] + i_g * g_g
        h_new = o_g * jnp.tanh(c_new)

        h_out_ref[layer] = h_new.astype(h_out_ref.dtype)
        c_out_ref[layer] = c_new.astype(c_out_ref.dtype)

        if layer + 1 < num_layers:
            # This layer's output feeds the next layer's W_ih rows.  Stale x
            # columns [h_pad:d_comb] hit zero weight rows for layers >= 1, and
            # the bias-ones column is left untouched, so results are exact.
            zh_ref[:, :h_pad] = h_new
            zh_ref[:, d_xb:] = h_ref[layer + 1]


# --------------------------- StackedLSTM wrapper --------------------------- #
def stacked_lstm_forward(x, states, w_stack):
    """Mirrors StackedLSTM.forward.

    x:       (B, D_in)
    states:  (h_stack, c_stack), each (num_layers, B, H)
    w_stack: (num_layers, K, 4*H_pad)  packed padded [W_ih ; bias ; W_hh]
    returns: (output, (h_stack_out, c_stack_out)) with original shapes
    """
    h0, c0 = states
    num_layers, batch, hidden = h0.shape
    d_in = x.shape[1]

    h_pad = _round_up(hidden, 128)
    k_dim = w_stack.shape[1]
    d_xb = k_dim - h_pad
    d_comb = d_xb - _BIAS_ROWS
    b_pad = _round_up(batch, 8)

    # Zero-pad to (8, 128)-aligned tiles once at the boundary.
    x_aug = jnp.zeros((b_pad, d_xb), jnp.float32)
    x_aug = x_aug.at[:batch, :d_in].set(x)
    x_aug = x_aug.at[:batch, d_comb].set(1.0)          # folded-bias ones column

    h_p = (jnp.zeros((num_layers, b_pad, h_pad), jnp.float32)
           .at[:, :batch, :hidden].set(h0))
    c_p = (jnp.zeros((num_layers, b_pad, h_pad), jnp.float32)
           .at[:, :batch, :hidden].set(c0))

    h_out_p, c_out_p = pl.pallas_call(
        _stacked_lstm_kernel,
        out_shape=(
            jax.ShapeDtypeStruct((num_layers, b_pad, h_pad), jnp.float32),
            jax.ShapeDtypeStruct((num_layers, b_pad, h_pad), jnp.float32),
        ),
        grid_spec=pltpu.PrefetchScalarGridSpec(
            num_scalar_prefetch=0,
            grid=(1,),
            in_specs=[
                pl.BlockSpec((b_pad, d_xb), lambda i: (0, 0)),               # x_aug
                pl.BlockSpec((num_layers, b_pad, h_pad), lambda i: (0, 0, 0)),  # h
                pl.BlockSpec((num_layers, b_pad, h_pad), lambda i: (0, 0, 0)),  # c
                pl.BlockSpec((num_layers, k_dim, 4 * h_pad),
                             lambda i: (0, 0, 0)),                           # W stack
            ],
            out_specs=[
                pl.BlockSpec((num_layers, b_pad, h_pad), lambda i: (0, 0, 0)),
                pl.BlockSpec((num_layers, b_pad, h_pad), lambda i: (0, 0, 0)),
            ],
            scratch_shapes=[pltpu.VMEM((b_pad, k_dim), jnp.float32)],
        ),
        compiler_params=pltpu.CompilerParams(
            dimension_semantics=("arbitrary",)),
        # New states overwrite the padded incoming state buffers in place.
        input_output_aliases={1: 0, 2: 1},
    )(x_aug, h_p, c_p, w_stack)

    h_states = h_out_p[:, :batch, :hidden]
    c_states = c_out_p[:, :batch, :hidden]
    return h_states[num_layers - 1], (h_states, c_states)


# --------------------------- parameter packing ----------------------------- #
def pack_stacked_params(params, input_size, hidden_size):
    """Pack per-layer (w_ih_t, w_hh_t, b) into one padded stacked weight tensor.

    params[l] = (w_ih_t (d_in_l, 4H), w_hh_t (H, 4H), b (4H,)) with torch gate
    order [i, f, g, o].  Layout along K: [W_ih rows | bias row (at d_comb) |
    W_hh rows]; each gate occupies an aligned H_pad-wide column block.  Unused
    rows/cols are zero, so the padded matmul is exact.
    """
    num_layers = len(params)
    H = hidden_size
    h_pad = _round_up(H, 128)
    d_comb = max(_round_up(input_size, 128), h_pad)
    d_xb = d_comb + _BIAS_ROWS
    k_dim = d_xb + h_pad

    w_stack = jnp.zeros((num_layers, k_dim, 4 * h_pad), jnp.float32)
    for layer, (w_ih_t, w_hh_t, b) in enumerate(params):
        d_in = w_ih_t.shape[0]
        for g in range(4):
            col = slice(g * h_pad, g * h_pad + H)
            w_stack = w_stack.at[layer, :d_in, col].set(
                w_ih_t[:, g * H:(g + 1) * H])
            w_stack = w_stack.at[layer, d_comb, col].set(
                b[g * H:(g + 1) * H])
            w_stack = w_stack.at[layer, d_xb:d_xb + H, col].set(
                w_hh_t[:, g * H:(g + 1) * H])
    return w_stack


# ------------------------------ pure-JAX ref ------------------------------ #
def _lstm_cell_ref(x, h, c, w_ih_t, w_hh_t, b):
    gates = x @ w_ih_t + h @ w_hh_t + b[None, :]
    H = h.shape[-1]
    i = jax.nn.sigmoid(gates[:, 0 * H:1 * H])
    f = jax.nn.sigmoid(gates[:, 1 * H:2 * H])
    g = jnp.tanh(gates[:, 2 * H:3 * H])
    o = jax.nn.sigmoid(gates[:, 3 * H:4 * H])
    c_new = f * c + i * g
    h_new = o * jnp.tanh(c_new)
    return h_new, c_new


def stacked_lstm_ref(x, states, params):
    h_stack, c_stack = states
    h_out, c_out = [], []
    output = x
    for layer_idx, (w_ih_t, w_hh_t, b) in enumerate(params):
        h_new, c_new = _lstm_cell_ref(
            output, h_stack[layer_idx], c_stack[layer_idx], w_ih_t, w_hh_t, b)
        output = h_new
        h_out.append(h_new)
        c_out.append(c_new)
    return output, (jnp.stack(h_out), jnp.stack(c_out))


# --------------------------------- main ------------------------------------ #
def _init_params(key, num_layers, input_size, hidden_size):
    """Deterministic uniform(-1/sqrt(H), 1/sqrt(H)) init, torch-style."""
    params = []
    bound = 1.0 / jnp.sqrt(jnp.float32(hidden_size))
    for layer_idx in range(num_layers):
        d_in = input_size if layer_idx == 0 else hidden_size
        key, k1, k2, k3, k4 = jax.random.split(key, 5)
        w_ih_t = jax.random.uniform(k1, (d_in, 4 * hidden_size),
                                    jnp.float32, -bound, bound)
        w_hh_t = jax.random.uniform(k2, (hidden_size, 4 * hidden_size),
                                    jnp.float32, -bound, bound)
        b_ih = jax.random.uniform(k3, (4 * hidden_size,),
                                  jnp.float32, -bound, bound)
        b_hh = jax.random.uniform(k4, (4 * hidden_size,),
                                  jnp.float32, -bound, bound)
        params.append((w_ih_t, w_hh_t, b_ih + b_hh))
    return params


if __name__ == "__main__":
    num_layers = 2
    batch = 4
    input_size = 16
    hidden_size = 32

    key = jax.random.PRNGKey(0)
    k_params, k_x, k_h, k_c = jax.random.split(key, 4)

    params = _init_params(k_params, num_layers, input_size, hidden_size)
    w_stack = pack_stacked_params(params, input_size, hidden_size)

    x = jax.random.normal(k_x, (batch, input_size), jnp.float32)
    h0 = jax.random.normal(k_h, (num_layers, batch, hidden_size), jnp.float32)
    c0 = jax.random.normal(k_c, (num_layers, batch, hidden_size), jnp.float32)

    fwd = jax.jit(stacked_lstm_forward)
    out, (h_out, c_out) = fwd(x, (h0, c0), w_stack)
    out = jax.block_until_ready(out)
    h_out = jax.block_until_ready(h_out)
    c_out = jax.block_until_ready(c_out)

    out_ref, (h_ref, c_ref) = stacked_lstm_ref(x, (h0, c0), params)
    assert out.shape == (batch, hidden_size)
    assert h_out.shape == (num_layers, batch, hidden_size)
    assert c_out.shape == (num_layers, batch, hidden_size)
    assert jnp.allclose(out, out_ref, atol=1e-4, rtol=1e-4), \
        float(jnp.max(jnp.abs(out - out_ref)))
    assert jnp.allclose(h_out, h_ref, atol=1e-4, rtol=1e-4), \
        float(jnp.max(jnp.abs(h_out - h_ref)))
    assert jnp.allclose(c_out, c_ref, atol=1e-4, rtol=1e-4), \
        float(jnp.max(jnp.abs(c_out - c_ref)))

    print("KERNEL_OK")
</pallas_src>

<mosaic_0001>
module attributes {stable_mosaic.version = 11 : i64} {
  func.func @_stacked_lstm_kernel(%arg0: i32, %arg1: memref<8x256xf32, #tpu.memory_space<vmem>>, %arg2: memref<2x8x128xf32, #tpu.memory_space<vmem>>, %arg3: memref<2x8x128xf32, #tpu.memory_space<vmem>>, %arg4: memref<2x384x512xf32, #tpu.memory_space<vmem>>, %arg5: memref<2x8x128xf32, #tpu.memory_space<vmem>>, %arg6: memref<2x8x128xf32, #tpu.memory_space<vmem>>, %arg7: memref<8x384xf32, #tpu.memory_space<vmem>>) attributes {dimension_semantics = [#tpu.dimension_semantics<arbitrary>], iteration_bounds = array<i64: 1>, scalar_prefetch = 0 : i64, scratch_operands = 1 : i64, tpu.core_type = #tpu.core_type<tc>, window_params = [{pipeline_mode = #tpu.pipeline_mode<synchronous>, transform_indices = @transform_0, window_bounds = array<i64: 8, 256>}, {pipeline_mode = #tpu.pipeline_mode<synchronous>, transform_indices = @transform_1, window_bounds = array<i64: 2, 8, 128>}, {pipeline_mode = #tpu.pipeline_mode<synchronous>, transform_indices = @transform_2, window_bounds = array<i64: 2, 8, 128>}, {pipeline_mode = #tpu.pipeline_mode<synchronous>, transform_indices = @transform_3, window_bounds = array<i64: 2, 384, 512>}, {pipeline_mode = #tpu.pipeline_mode<synchronous>, transform_indices = @transform_4, window_bounds = array<i64: 2, 8, 128>}, {pipeline_mode = #tpu.pipeline_mode<synchronous>, transform_indices = @transform_5, window_bounds = array<i64: 2, 8, 128>}]} {
    %c0 = arith.constant 0 : index
    %c0_0 = arith.constant 0 : index
    %0 = vector.load %arg1[%c0, %c0_0] : memref<8x256xf32, #tpu.memory_space<vmem>>, vector<8x256xf32>
    %c0_1 = arith.constant 0 : index
    %c0_2 = arith.constant 0 : index
    %1 = vector.load %arg7[%c0_1, %c0_2] : memref<8x384xf32, #tpu.memory_space<vmem>>, vector<8x256xf32>
    tpu.vector_store %arg7[%c0_1, %c0_2], %0 {strides = array<i32>} : memref<8x384xf32, #tpu.memory_space<vmem>>, vector<8x256xf32>,
    %c0_3 = arith.constant 0 : index
    %c0_4 = arith.constant 0 : index
    %c0_5 = arith.constant 0 : index
    %2 = vector.load %arg2[%c0_3, %c0_4, %c0_5] : memref<2x8x128xf32, #tpu.memory_space<vmem>>, vector<1x8x128xf32>
    %3 = vector.shape_cast %2 : vector<1x8x128xf32> to vector<8x128xf32>
    %c0_6 = arith.constant 0 : index
    %c256 = arith.constant 256 : index
    %4 = vector.load %arg7[%c0_6, %c256] : memref<8x384xf32, #tpu.memory_space<vmem>>, vector<8x128xf32>
    tpu.vector_store %arg7[%c0_6, %c256], %3 {strides = array<i32>} : memref<8x384xf32, #tpu.memory_space<vmem>>, vector<8x128xf32>,
    %c0_7 = arith.constant 0 : index
    %c0_8 = arith.constant 0 : index
    %5 = vector.load %arg7[%c0_7, %c0_8] : memref<8x384xf32, #tpu.memory_space<vmem>>, vector<8x384xf32>
    %c0_9 = arith.constant 0 : index
    %c0_10 = arith.constant 0 : index
    %c0_11 = arith.constant 0 : index
    %6 = vector.load %arg4[%c0_9, %c0_10, %c0_11] : memref<2x384x512xf32, #tpu.memory_space<vmem>>, vector<1x384x512xf32>
    %7 = vector.shape_cast %6 : vector<1x384x512xf32> to vector<384x512xf32>
    %cst = arith.constant dense<0.000000e+00> : vector<8x512xf32>
    %8 = tpu.matmul %5, %7, %cst {dimension_numbers = #tpu.dot_dimension_numbers<[1], [0], [0], [1], [0, 0, 1, 1], [], []>} : vector<8x384xf32>, vector<384x512xf32>, vector<8x512xf32> -> vector<8x512xf32>
    %9 = vector.extract_strided_slice %8 {offsets = [0, 0], sizes = [8, 128], strides = [1, 1]} : vector<8x512xf32> to vector<8x128xf32>
    %10 = arith.negf %9 : vector<8x128xf32>
    %11 = math.exp %10 : vector<8x128xf32>
    %cst_12 = arith.constant 1.000000e+00 : f32
    %12 = vector.broadcast %cst_12 : f32 to vector<8x128xf32>
    %13 = arith.addf %12, %11 : vector<8x128xf32>
    %14 = arith.divf %12, %13 : vector<8x128xf32>
    %15 = vector.extract_strided_slice %8 {offsets = [0, 128], sizes = [8, 128], strides = [1, 1]} : vector<8x512xf32> to vector<8x128xf32>
    %16 = arith.negf %15 : vector<8x128xf32>
    %17 = math.exp %16 : vector<8x128xf32>
    %cst_13 = arith.constant 1.000000e+00 : f32
    %18 = vector.broadcast %cst_13 : f32 to vector<8x128xf32>
    %19 = arith.addf %18, %17 : vector<8x128xf32>
    %20 = arith.divf %18, %19 : vector<8x128xf32>
    %21 = vector.extract_strided_slice %8 {offsets = [0, 256], sizes = [8, 128], strides = [1, 1]} : vector<8x512xf32> to vector<8x128xf32>
    %22 = math.tanh %21 : vector<8x128xf32>
    %23 = vector.extract_strided_slice %8 {offsets = [0, 384], sizes = [8, 128], strides = [1, 1]} : vector<8x512xf32> to vector<8x128xf32>
    %24 = arith.negf %23 : vector<8x128xf32>
    %25 = math.exp %24 : vector<8x128xf32>
    %cst_14 = arith.constant 1.000000e+00 : f32
    %26 = vector.broadcast %cst_14 : f32 to vector<8x128xf32>
    %27 = arith.addf %26, %25 : vector<8x128xf32>
    %28 = arith.divf %26, %27 : vector<8x128xf32>
    %c0_15 = arith.constant 0 : index
    %c0_16 = arith.constant 0 : index
    %c0_17 = arith.constant 0 : index
    %29 = vector.load %arg3[%c0_15, %c0_16, %c0_17] : memref<2x8x128xf32, #tpu.memory_space<vmem>>, vector<1x8x128xf32>
    %30 = vector.shape_cast %29 : vector<1x8x128xf32> to vector<8x128xf32>
    %31 = arith.mulf %20, %30 : vector<8x128xf32>
    %32 = arith.mulf %14, %22 : vector<8x128xf32>
    %33 = arith.addf %31, %32 : vector<8x128xf32>
    %34 = math.tanh %33 : vector<8x128xf32>
    %35 = arith.mulf %28, %34 : vector<8x128xf32>
    %c0_18 = arith.constant 0 : index
    %c0_19 = arith.constant 0 : index
    %c0_20 = arith.constant 0 : index
    %36 = vector.load %arg5[%c0_18, %c0_19, %c0_20] : memref<2x8x128xf32, #tpu.memory_space<vmem>>, vector<1x8x128xf32>
    %37 = vector.shape_cast %36 : vector<1x8x128xf32> to vector<8x128xf32>
    %38 = vector.shape_cast %35 : vector<8x128xf32> to vector<1x8x128xf32>
    tpu.vector_store %arg5[%c0_18, %c0_19, %c0_20], %38 {strides = array<i32>} : memref<2x8x128xf32, #tpu.memory_space<vmem>>, vector<1x8x128xf32>,
    %c0_21 = arith.constant 0 : index
    %c0_22 = arith.constant 0 : index
    %c0_23 = arith.constant 0 : index
    %39 = vector.load %arg6[%c0_21, %c0_22, %c0_23] : memref<2x8x128xf32, #tpu.memory_space<vmem>>, vector<1x8x128xf32>
    %40 = vector.shape_cast %39 : vector<1x8x128xf32> to vector<8x128xf32>
    %41 = vector.shape_cast %33 : vector<8x128xf32> to vector<1x8x128xf32>
    tpu.vector_store %arg6[%c0_21, %c0_22, %c0_23], %41 {strides = array<i32>} : memref<2x8x128xf32, #tpu.memory_space<vmem>>, vector<1x8x128xf32>,
    %c0_24 = arith.constant 0 : index
    %c0_25 = arith.constant 0 : index
    %42 = vector.load %arg7[%c0_24, %c0_25] : memref<8x384xf32, #tpu.memory_space<vmem>>, vector<8x128xf32>
    tpu.vector_store %arg7[%c0_24, %c0_25], %35 {strides = array<i32>} : memref<8x384xf32, #tpu.memory_space<vmem>>, vector<8x128xf32>,
    %c1 = arith.constant 1 : index
    %c0_26 = arith.constant 0 : index
    %c0_27 = arith.constant 0 : index
    %43 = vector.load %arg2[%c1, %c0_26, %c0_27] : memref<2x8x128xf32, #tpu.memory_space<vmem>>, vector<1x8x128xf32>
    %44 = vector.shape_cast %43 : vector<1x8x128xf32> to vector<8x128xf32>
    %c0_28 = arith.constant 0 : index
    %c256_29 = arith.constant 256 : index
    %45 = vector.load %arg7[%c0_28, %c256_29] : memref<8x384xf32, #tpu.memory_space<vmem>>, vector<8x128xf32>
    tpu.vector_store %arg7[%c0_28, %c256_29], %44 {strides = array<i32>} : memref<8x384xf32, #tpu.memory_space<vmem>>, vector<8x128xf32>,
    %c0_30 = arith.constant 0 : index
    %c0_31 = arith.constant 0 : index
    %46 = vector.load %arg7[%c0_30, %c0_31] : memref<8x384xf32, #tpu.memory_space<vmem>>, vector<8x384xf32>
    %c1_32 = arith.constant 1 : index
    %c0_33 = arith.constant 0 : index
    %c0_34 = arith.constant 0 : index
    %47 = vector.load %arg4[%c1_32, %c0_33, %c0_34] : memref<2x384x512xf32, #tpu.memory_space<vmem>>, vector<1x384x512xf32>
    %48 = vector.shape_cast %47 : vector<1x384x512xf32> to vector<384x512xf32>
    %cst_35 = arith.constant dense<0.000000e+00> : vector<8x512xf32>
    %49 = tpu.matmul %46, %48, %cst_35 {dimension_numbers = #tpu.dot_dimension_numbers<[1], [0], [0], [1], [0, 0, 1, 1], [], []>} : vector<8x384xf32>, vector<384x512xf32>, vector<8x512xf32> -> vector<8x512xf32>
    %50 = vector.extract_strided_slice %49 {offsets = [0, 0], sizes = [8, 128], strides = [1, 1]} : vector<8x512xf32> to vector<8x128xf32>
    %51 = arith.negf %50 : vector<8x128xf32>
    %52 = math.exp %51 : vector<8x128xf32>
    %cst_36 = arith.constant 1.000000e+00 : f32
    %53 = vector.broadcast %cst_36 : f32 to vector<8x128xf32>
    %54 = arith.addf %53, %52 : vector<8x128xf32>
    %55 = arith.divf %53, %54 : vector<8x128xf32>
    %56 = vector.extract_strided_slice %49 {offsets = [0, 128], sizes = [8, 128], strides = [1, 1]} : vector<8x512xf32> to vector<8x128xf32>
    %57 = arith.negf %56 : vector<8x128xf32>
    %58 = math.exp %57 : vector<8x128xf32>
    %cst_37 = arith.constant 1.000000e+00 : f32
    %59 = vector.broadcast %cst_37 : f32 to vector<8x128xf32>
    %60 = arith.addf %59, %58 : vector<8x128xf32>
    %61 = arith.divf %59, %60 : vector<8x128xf32>
    %62 = vector.extract_strided_slice %49 {offsets = [0, 256], sizes = [8, 128], strides = [1, 1]} : vector<8x512xf32> to vector<8x128xf32>
    %63 = math.tanh %62 : vector<8x128xf32>
    %64 = vector.extract_strided_slice %49 {offsets = [0, 384], sizes = [8, 128], strides = [1, 1]} : vector<8x512xf32> to vector<8x128xf32>
    %65 = arith.negf %64 : vector<8x128xf32>
    %66 = math.exp %65 : vector<8x128xf32>
    %cst_38 = arith.constant 1.000000e+00 : f32
    %67 = vector.broadcast %cst_38 : f32 to vector<8x128xf32>
    %68 = arith.addf %67, %66 : vector<8x128xf32>
    %69 = arith.divf %67, %68 : vector<8x128xf32>
    %c1_39 = arith.constant 1 : index
    %c0_40 = arith.constant 0 : index
    %c0_41 = arith.constant 0 : index
    %70 = vector.load %arg3[%c1_39, %c0_40, %c0_41] : memref<2x8x128xf32, #tpu.memory_space<vmem>>, vector<1x8x128xf32>
    %71 = vector.shape_cast %70 : vector<1x8x128xf32> to vector<8x128xf32>
    %72 = arith.mulf %61, %71 : vector<8x128xf32>
    %73 = arith.mulf %55, %63 : vector<8x128xf32>
    %74 = arith.addf %72, %73 : vector<8x128xf32>
    %75 = math.tanh %74 : vector<8x128xf32>
    %76 = arith.mulf %69, %75 : vector<8x128xf32>
    %c1_42 = arith.constant 1 : index
    %c0_43 = arith.constant 0 : index
    %c0_44 = arith.constant 0 : index
    %77 = vector.load %arg5[%c1_42, %c0_43, %c0_44] : memref<2x8x128xf32, #tpu.memory_space<vmem>>, vector<1x8x128xf32>
    %78 = vector.shape_cast %77 : vector<1x8x128xf32> to vector<8x128xf32>
    %79 = vector.shape_cast %76 : vector<8x128xf32> to vector<1x8x128xf32>
    tpu.vector_store %arg5[%c1_42, %c0_43, %c0_44], %79 {strides = array<i32>} : memref<2x8x128xf32, #tpu.memory_space<vmem>>, vector<1x8x128xf32>,
    %c1_45 = arith.constant 1 : index
    %c0_46 = arith.constant 0 : index
    %c0_47 = arith.constant 0 : index
    %80 = vector.load %arg6[%c1_45, %c0_46, %c0_47] : memref<2x8x128xf32, #tpu.memory_space<vmem>>, vector<1x8x128xf32>
    %81 = vector.shape_cast %80 : vector<1x8x128xf32> to vector<8x128xf32>
    %82 = vector.shape_cast %74 : vector<8x128xf32> to vector<1x8x128xf32>
    tpu.vector_store %arg6[%c1_45, %c0_46, %c0_47], %82 {strides = array<i32>} : memref<2x8x128xf32, #tpu.memory_space<vmem>>, vector<1x8x128xf32>,
    return
  }
  func.func @transform_0(%arg0: i32) -> (i32, i32) {
    %c0_i32 = arith.constant 0 : i32
    %c0_i32_0 = arith.constant 0 : i32
    %c0_i32_1 = arith.constant 0 : i32
    return %c0_i32, %c0_i32_0 : i32, i32
  }
  func.func @transform_1(%arg0: i32) -> (i32, i32, i32) {
    %c0_i32 = arith.constant 0 : i32
    %c0_i32_0 = arith.constant 0 : i32
    %c0_i32_1 = arith.constant 0 : i32
    %c0_i32_2 = arith.constant 0 : i32
    return %c0_i32, %c0_i32_0, %c0_i32_1 : i32, i32, i32
  }
  func.func @transform_2(%arg0: i32) -> (i32, i32, i32) {
    %c0_i32 = arith.constant 0 : i32
    %c0_i32_0 = arith.constant 0 : i32
    %c0_i32_1 = arith.constant 0 : i32
    %c0_i32_2 = arith.constant 0 : i32
    return %c0_i32, %c0_i32_0, %c0_i32_1 : i32, i32, i32
  }
  func.func @transform_3(%arg0: i32) -> (i32, i32, i32) {
    %c0_i32 = arith.constant 0 : i32
    %c0_i32_0 = arith.constant 0 : i32
    %c0_i32_1 = arith.constant 0 : i32
    %c0_i32_2 = arith.constant 0 : i32
    return %c0_i32, %c0_i32_0, %c0_i32_1 : i32, i32, i32
  }
  func.func @transform_4(%arg0: i32) -> (i32, i32, i32) {
    %c0_i32 = arith.constant 0 : i32
    %c0_i32_0 = arith.constant 0 : i32
    %c0_i32_1 = arith.constant 0 : i32
    %c0_i32_2 = arith.constant 0 : i32
    return %c0_i32, %c0_i32_0, %c0_i32_1 : i32, i32, i32
  }
  func.func @transform_5(%arg0: i32) -> (i32, i32, i32) {
    %c0_i32 = arith.constant 0 : i32
    %c0_i32_0 = arith.constant 0 : i32
    %c0_i32_1 = arith.constant 0 : i32
    %c0_i32_2 = arith.constant 0 : i32
    return %c0_i32, %c0_i32_0, %c0_i32_1 : i32, i32, i32
  }
}

</mosaic_0001>

<bundles_post_ra>
// kernel: stacked_lstm_forward.1
= control target key start
LH: loop header
LB: loop body
LE: loop exit
PB: predicated region body
PF: predicated region fallthrough
CT: control target
= control target key end

     0   :  { %11 = vsyncpa [#allocation4], 0  ;;  %s1530_s18 = smov [#allocation3]   ;;  %s1616_s0 = inlined_call_operand.vmem [shape: f32[8,256], index: 0, kind: input, shape index: {}]   ;;  %s1617_s1 = inlined_call_operand.vmem [shape: f32[2,8,128], index: 1, kind: input, shape index: {}, may-alias: {1,4}]   ;;  %s1618_s2 = inlined_call_operand.vmem [shape: f32[2,8,128], index: 2, kind: input, shape index: {}, may-alias: {2,5}]   ;;  %s1619_s3 = inlined_call_operand.hbm [shape: f32[2,384,512], index: 3, kind: input, shape index: {}]   ;;  %s1620_s4 = inlined_call_operand.vmem [shape: f32[2,8,128], index: 4, kind: output, shape index: {0}, may-alias: {1,4}]   ;;  %s1621_s5 = inlined_call_operand.vmem [shape: f32[2,8,128], index: 5, kind: output, shape index: {1}, may-alias: {2,5}]  }
   0x1   :  { %s23_s19 = sshll.u32 %s1530_s18, 4  ;;  %s1506_s22 = scalar_lea.hbm %s1619_s3, 49152  ;;  %s24_s19 = int_to_ptr.vmem [resolvable:$true] %s23_s19 }
   0x2   :  { %p1507_p0 = scmp.ne.s32.totalorder %s1619_s3, %s1506_s22  ;;  %p1510_p1 = scmp.lt.u32.totalorder %s1506_s22, %s1619_s3 }
   0x4   :  { %p1512_p2 = pnand %p1510_p1, %p1507_p0 }
   0x6   :  { %1515 = shalt.err (!%p1512_p2)
}
   0x7   :  { %s1516_s27 = scalar_lea.vmem %s24_s19, 49152  ;;  %p1521_p4 = scmp.lt.s32.totalorder %s24_s19, %s24_s19 }
   0x8   :  { %p1517_p3 = scmp.ne.s32.totalorder %s24_s19, %s1516_s27  ;;  %p1522_p5 = scmp.lt.s32.totalorder %s1516_s27, %s1516_s27 }
   0xa   :  { %p1523_p6 = por %p1522_p5, %p1521_p4 }
   0xc   :  { %p1524_p7 = pnand %p1523_p6, %p1517_p3 }
   0xe   :  { %1527 = shalt.err (!%p1524_p7)
}
   0xf   :  { %s1531_s28 = smov 512   ;;  %s1532_s29 = smov 32  }
  0x10   :  { %29 = dma.hbm_to_vmem [thread:$0]  %s1619_s3, 49152, %s24_s19, [#allocation4], %s1531_s28, %s1531_s28, %s1532_s29  }
  0x11   :  { %1528 = dma.done.wait [#allocation4], 49152  }
  0x12   :  { %1529 = vsyncadd [#allocation4], 4294918144  ;;  %v43_v0 = vld [vmem:[#allocation3 + $0x8] sm:$0xff]  ;;  %v45_v2 = vld [vmem:[#allocation3 + $0x18] sm:$0xff] }
  0x13   :  { %v47_v1 = vld [vmem:[#allocation3 + $0x28] sm:$0xff]  ;;  %v49_v4 = vld [vmem:[#allocation3 + $0x38] sm:$0xff]  ;;  %v42_v5 = vld [vmem:[#allocation3] sm:$0xff] }
  0x14   :  { %v1078_v3 = vpack.c.bf16 %v47_v1, %v43_v0  ;;  %v46_v6 = vld [vmem:[#allocation3 + $0x20] sm:$0xff]  ;;  %v1174_v7 = vpack.c.bf16 %v49_v4, %v45_v2  ;;  %v44_v9 = vld [vmem:[#allocation3 + $0x10] sm:$0xff]  ;;  %v51_v11 = vld [vmem:[#allocation3 + $0x48] sm:$0xff] }
  0x15   :  { %v1080_v8 = vpack.c.bf16 %v46_v6, %v42_v5  ;;  %v48_v10 = vld [vmem:[#allocation3 + $0x30] sm:$0xff]  ;;  %v55_v13 = vld [vmem:[#allocation3 + $0x68] sm:$0xff]  ;;  %v53_v14 = vld [vmem:[#allocation3 + $0x58] sm:$0xff] }
  0x16   :  { %1079 = vmatprep.subr.bf16.mxu0 %v1078_v3  ;;  %v1176_v12 = vpack.c.bf16 %v48_v10, %v44_v9  ;;  %v57_v15 = vld [vmem:[#allocation3 + $0x78] sm:$0xff]  ;;  %1175 = vmatprep.subr.bf16.mxu1 %v1174_v7  ;;  %v1082_v16 = vpack.c.bf16 %v55_v13, %v51_v11  ;;  %v50_v18 = vld [vmem:[#allocation3 + $0x40] sm:$0xff]  ;;  %v52_v20 = vld [vmem:[#allocation3 + $0x50] sm:$0xff] }
  0x17   :  { %1081 = vmatpush1.bf16.msra.mxu0 %v1080_v8  ;;  %v1178_v17 = vpack.c.bf16 %v57_v15, %v53_v14  ;;  %v54_v19 = vld [vmem:[#allocation3 + $0x60] sm:$0xff]  ;;  %v56_v22 = vld [vmem:[#allocation3 + $0x70] sm:$0xff]  ;;  %v59_v23 = vld [vmem:[#allocation3 + $0x88] sm:$0xff] }
  0x18   :  { %1177 = vmatpush1.bf16.msra.mxu1 %v1176_v12  ;;  %v1084_v21 = vpack.c.bf16 %v54_v19, %v50_v18  ;;  %v63_v24 = vld [vmem:[#allocation3 + $0xa8] sm:$0xff]  ;;  %1083 = vmatprep.subr.bf16.mxu0 %v1082_v16  ;;  %v1180_v25 = vpack.c.bf16 %v56_v22, %v52_v20  ;;  %v61_v27 = vld [vmem:[#allocation3 + $0x98] sm:$0xff]  ;;  %v58_v29 = vld [vmem:[#allocation3 + $0x80] sm:$0xff] }
  0x19   :  { %1179 = vmatprep.subr.bf16.mxu1 %v1178_v17  ;;  %v1086_v26 = vpack.c.bf16 %v63_v24, %v59_v23  ;;  %v65_v28 = vld [vmem:[#allocation3 + $0xb8] sm:$0xff]  ;;  %v62_v31 = vld [vmem:[#allocation3 + $0xa0] sm:$0xff]  ;;  %v60_v32 = vld [vmem:[#allocation3 + $0x90] sm:$0xff] }
  0x1a   :  { %v1182_v30 = vpack.c.bf16 %v65_v28, %v61_v27  ;;  %v64_v33 = vld [vmem:[#allocation3 + $0xb0] sm:$0xff]  ;;  %v1088_v34 = vpack.c.bf16 %v62_v31, %v58_v29  ;;  %v67_v35 = vld [vmem:[#allocation3 + $0xc8] sm:$0xff]  ;;  %v69_v37 = vld [vmem:[#allocation3 + $0xd8] sm:$0xff] }
  0x1b   :  { %1085 = vmatpush1.bf16.msra.mxu0 %v1084_v21  ;;  %v71_v36 = vld [vmem:[#allocation3 + $0xe8] sm:$0xff]  ;;  %v1184_v38 = vpack.c.bf16 %v64_v33, %v60_v32  ;;  %v73_v40 = vld [vmem:[#allocation3 + $0xf8] sm:$0xff]  ;;  %v66_v41 = vld [vmem:[#allocation3 + $0xc0] sm:$0xff] }
  0x1c   :  { %1181 = vmatpush1.bf16.msra.mxu1 %v1180_v25  ;;  %1087 = vmatprep.subr.bf16.mxu0 %v1086_v26  ;;  %v1090_v39 = vpack.c.bf16 %v71_v36, %v67_v35  ;;  %v70_v42 = vld [vmem:[#allocation3 + $0xe0] sm:$0xff]  ;;  %v1186_v43 = vpack.c.bf16 %v73_v40, %v69_v37  ;;  %v68_v44 = vld [vmem:[#allocation3 + $0xd0] sm:$0xff]  ;;  %v75_v46 = vld [vmem:[#allocation3 + $0x108] sm:$0xff] }
  0x1d   :  { %1183 = vmatprep.subr.bf16.mxu1 %v1182_v30  ;;  %v72_v45 = vld [vmem:[#allocation3 + $0xf0] sm:$0xff]  ;;  %v79_v47 = vld [vmem:[#allocation3 + $0x128] sm:$0xff]  ;;  %v77_v48 = vld [vmem:[#allocation3 + $0x118] sm:$0xff]  ;;  %v1092_v50 = vpack.c.bf16 %v70_v42, %v66_v41 }
  0x1e   :  { %v81_v49 = vld [vmem:[#allocation3 + $0x138] sm:$0xff]  ;;  %v1188_v51 = vpack.c.bf16 %v72_v45, %v68_v44  ;;  %v1094_v52 = vpack.c.bf16 %v79_v47, %v75_v46  ;;  %v74_v53 = vld [vmem:[#allocation3 + $0x100] sm:$0xff]  ;;  %v76_v55 = vld [vmem:[#allocation3 + $0x110] sm:$0xff] }
  0x1f   :  { %1089 = vmatpush1.bf16.msra.mxu0 %v1088_v34  ;;  %v78_v54 = vld [vmem:[#allocation3 + $0x120] sm:$0xff]  ;;  %v1190_v56 = vpack.c.bf16 %v81_v49, %v77_v48  ;;  %v80_v57 = vld [vmem:[#allocation3 + $0x130] sm:$0xff]  ;;  %v83_v58 = vld [vmem:[#allocation3 + $0x148] sm:$0xff] }
  0x20   :  { %1185 = vmatpush1.bf16.msra.mxu1 %v1184_v38  ;;  %1091 = vmatprep.subr.bf16.mxu0 %v1090_v39  ;;  %v87_v59 = vld [vmem:[#allocation3 + $0x168] sm:$0xff]  ;;  %v85_v60 = vld [vmem:[#allocation3 + $0x158] sm:$0xff]  ;;  %v1096_v62 = vpack.c.bf16 %v78_v54, %v74_v53  ;;  %v1192_v63 = vpack.c.bf16 %v80_v57, %v76_v55  ;;  %v82_v1 = vld [vmem:[#allocation3 + $0x140] sm:$0xff] }
  0x21   :  { %1187 = vmatprep.subr.bf16.mxu1 %v1186_v43  ;;  %v89_v61 = vld [vmem:[#allocation3 + $0x178] sm:$0xff]  ;;  %v1098_v0 = vpack.c.bf16 %v87_v59, %v83_v58  ;;  %v86_v2 = vld [vmem:[#allocation3 + $0x160] sm:$0xff]  ;;  %v84_v3 = vld [vmem:[#allocation3 + $0x150] sm:$0xff] }
  0x22   :  { %v1194_v4 = vpack.c.bf16 %v89_v61, %v85_v60  ;;  %v88_v5 = vld [vmem:[#allocation3 + $0x170] sm:$0xff]  ;;  %v91_v6 = vld [vmem:[#allocation3 + $0x188] sm:$0xff]  ;;  %v93_v8 = vld [vmem:[#allocation3 + $0x198] sm:$0xff]  ;;  %v1100_v10 = vpack.c.bf16 %v86_v2, %v82_v1 }
  0x23   :  { %1093 = vmatpush1.bf16.msra.mxu0 %v1092_v50  ;;  %v95_v7 = vld [vmem:[#allocation3 + $0x1a8] sm:$0xff]  ;;  %v97_v9 = vld [vmem:[#allocation3 + $0x1b8] sm:$0xff]  ;;  %v1196_v11 = vpack.c.bf16 %v88_v5, %v84_v3  ;;  %v90_v13 = vld [vmem:[#allocation3 + $0x180] sm:$0xff] }
  0x24   :  { %1189 = vmatpush1.bf16.msra.mxu1 %v1188_v51  ;;  %1095 = vmatprep.subr.bf16.mxu0 %v1094_v52  ;;  %v1102_v12 = vpack.c.bf16 %v95_v7, %v91_v6  ;;  %v94_v14 = vld [vmem:[#allocation3 + $0x1a0] sm:$0xff]  ;;  %v92_v15 = vld [vmem:[#allocation3 + $0x190] sm:$0xff]  ;;  %v1198_v16 = vpack.c.bf16 %v97_v9, %v93_v8  ;;  %v99_v18 = vld [vmem:[#allocation3 + $0x1c8] sm:$0xff] }
  0x25   :  { %1191 = vmatprep.subr.bf16.mxu1 %v1190_v56  ;;  %v96_v17 = vld [vmem:[#allocation3 + $0x1b0] sm:$0xff]  ;;  %v103_v19 = vld [vmem:[#allocation3 + $0x1e8] sm:$0xff]  ;;  %v101_v20 = vld [vmem:[#allocation3 + $0x1d8] sm:$0xff]  ;;  %v1104_v22 = vpack.c.bf16 %v94_v14, %v90_v13 }
  0x26   :  { %v105_v21 = vld [vmem:[#allocation3 + $0x1f8] sm:$0xff]  ;;  %v1200_v23 = vpack.c.bf16 %v96_v17, %v92_v15  ;;  %v1106_v24 = vpack.c.bf16 %v103_v19, %v99_v18  ;;  %v98_v25 = vld [vmem:[#allocation3 + $0x1c0] sm:$0xff]  ;;  %v100_v27 = vld [vmem:[#allocation3 + $0x1d0] sm:$0xff] }
  0x27   :  { %1097 = vmatpush1.bf16.msra.mxu0 %v1096_v62  ;;  %v102_v26 = vld [vmem:[#allocation3 + $0x1e0] sm:$0xff]  ;;  %v1202_v28 = vpack.c.bf16 %v105_v21, %v101_v20  ;;  %v104_v29 = vld [vmem:[#allocation3 + $0x1f0] sm:$0xff]  ;;  %v107_v30 = vld [vmem:[#allocation3 + $0x208] sm:$0xff] }
  0x28   :  { %1193 = vmatpush1.bf16.msra.mxu1 %v1192_v63  ;;  %1099 = vmatprep.subr.bf16.mxu0 %v1098_v0  ;;  %v111_v31 = vld [vmem:[#allocation3 + $0x228] sm:$0xff]  ;;  %v109_v32 = vld [vmem:[#allocation3 + $0x218] sm:$0xff]  ;;  %v1108_v34 = vpack.c.bf16 %v102_v26, %v98_v25  ;;  %v1204_v35 = vpack.c.bf16 %v104_v29, %v100_v27  ;;  %v106_v37 = vld [vmem:[#allocation3 + $0x200] sm:$0xff] }
  0x29   :  { %1195 = vmatprep.subr.bf16.mxu1 %v1194_v4  ;;  %v113_v33 = vld [vmem:[#allocation3 + $0x238] sm:$0xff]  ;;  %v1110_v36 = vpack.c.bf16 %v111_v31, %v107_v30  ;;  %v110_v38 = vld [vmem:[#allocation3 + $0x220] sm:$0xff]  ;;  %v108_v39 = vld [vmem:[#allocation3 + $0x210] sm:$0xff] }
  0x2a   :  { %v1206_v40 = vpack.c.bf16 %v113_v33, %v109_v32  ;;  %v112_v41 = vld [vmem:[#allocation3 + $0x230] sm:$0xff]  ;;  %v115_v42 = vld [vmem:[#allocation3 + $0x248] sm:$0xff]  ;;  %v117_v44 = vld [vmem:[#allocation3 + $0x258] sm:$0xff]  ;;  %v1112_v46 = vpack.c.bf16 %v110_v38, %v106_v37 }
  0x2b   :  { %1101 = vmatpush1.bf16.msra.mxu0 %v1100_v10  ;;  %v119_v43 = vld [vmem:[#allocation3 + $0x268] sm:$0xff]  ;;  %v121_v45 = vld [vmem:[#allocation3 + $0x278] sm:$0xff]  ;;  %v1208_v47 = vpack.c.bf16 %v112_v41, %v108_v39  ;;  %v114_v49 = vld [vmem:[#allocation3 + $0x240] sm:$0xff] }
  0x2c   :  { %1197 = vmatpush1.bf16.msra.mxu1 %v1196_v11  ;;  %1103 = vmatprep.subr.bf16.mxu0 %v1102_v12  ;;  %v1114_v48 = vpack.c.bf16 %v119_v43, %v115_v42  ;;  %v118_v50 = vld [vmem:[#allocation3 + $0x260] sm:$0xff]  ;;  %v116_v51 = vld [vmem:[#allocation3 + $0x250] sm:$0xff]  ;;  %v1210_v52 = vpack.c.bf16 %v121_v45, %v117_v44  ;;  %v123_v54 = vld [vmem:[#allocation3 + $0x288] sm:$0xff] }
  0x2d   :  { %1199 = vmatprep.subr.bf16.mxu1 %v1198_v16  ;;  %v120_v53 = vld [vmem:[#allocation3 + $0x270] sm:$0xff]  ;;  %v127_v55 = vld [vmem:[#allocation3 + $0x2a8] sm:$0xff]  ;;  %v125_v56 = vld [vmem:[#allocation3 + $0x298] sm:$0xff]  ;;  %v1116_v58 = vpack.c.bf16 %v118_v50, %v114_v49 }
  0x2e   :  { %v129_v57 = vld [vmem:[#allocation3 + $0x2b8] sm:$0xff]  ;;  %v1212_v59 = vpack.c.bf16 %v120_v53, %v116_v51  ;;  %v1118_v60 = vpack.c.bf16 %v127_v55, %v123_v54  ;;  %v122_v61 = vld [vmem:[#allocation3 + $0x280] sm:$0xff]  ;;  %v124_v63 = vld [vmem:[#allocation3 + $0x290] sm:$0xff] }
  0x2f   :  { %1105 = vmatpush1.bf16.msra.mxu0 %v1104_v22  ;;  %v126_v62 = vld [vmem:[#allocation3 + $0x2a0] sm:$0xff]  ;;  %v1214_v0 = vpack.c.bf16 %v129_v57, %v125_v56  ;;  %v128_v1 = vld [vmem:[#allocation3 + $0x2b0] sm:$0xff]  ;;  %v131_v2 = vld [vmem:[#allocation3 + $0x2c8] sm:$0xff] }
  0x30   :  { %1201 = vmatpush1.bf16.msra.mxu1 %v1200_v23  ;;  %1107 = vmatprep.subr.bf16.mxu0 %v1106_v24  ;;  %v135_v3 = vld [vmem:[#allocation3 + $0x2e8] sm:$0xff]  ;;  %v133_v4 = vld [vmem:[#allocation3 + $0x2d8] sm:$0xff]  ;;  %v1120_v6 = vpack.c.bf16 %v126_v62, %v122_v61  ;;  %v130_v7 = vld [vmem:[#allocation3 + $0x2c0] sm:$0xff]  ;;  %v1216_v8 = vpack.c.bf16 %v128_v1, %v124_v63 }
  0x31   :  { %1203 = vmatprep.subr.bf16.mxu1 %v1202_v28  ;;  %v137_v5 = vld [vmem:[#allocation3 + $0x2f8] sm:$0xff]  ;;  %v1122_v9 = vpack.c.bf16 %v135_v3, %v131_v2  ;;  %v134_v10 = vld [vmem:[#allocation3 + $0x2e0] sm:$0xff]  ;;  %v132_v11 = vld [vmem:[#allocation3 + $0x2d0] sm:$0xff] }
  0x32   :  { %v136_v12 = vld [vmem:[#allocation3 + $0x2f0] sm:$0xff]  ;;  %v1218_v13 = vpack.c.bf16 %v137_v5, %v133_v4  ;;  %v139_v14 = vld [vmem:[#allocation3 + $0x308] sm:$0xff]  ;;  %v141_v17 = vld [vmem:[#allocation3 + $0x318] sm:$0xff]  ;;  %v1124_v19 = vpack.c.bf16 %v134_v10, %v130_v7 }
  0x33   :  { %1109 = vmatpush1.bf16.msra.mxu0 %v1108_v34  ;;  %v143_v15 = vld [vmem:[#allocation3 + $0x328] sm:$0xff]  ;;  %v145_v18 = vld [vmem:[#allocation3 + $0x338] sm:$0xff]  ;;  %v1220_v20 = vpack.c.bf16 %v136_v12, %v132_v11  ;;  %v138_v22 = vld [vmem:[#allocation3 + $0x300] sm:$0xff] }
  0x34   :  { %1205 = vmatpush1.bf16.msra.mxu1 %v1204_v35  ;;  %1111 = vmatprep.subr.bf16.mxu0 %v1110_v36  ;;  %v1579_v16 = vld [vmem:[%s1616_s0 + $0x8] sm:$0xff]  ;;  %v1126_v21 = vpack.c.bf16 %v143_v15, %v139_v14  ;;  %v142_v23 = vld [vmem:[#allocation3 + $0x320] sm:$0xff]  ;;  %v140_v24 = vld [vmem:[#allocation3 + $0x310] sm:$0xff]  ;;  %v1222_v25 = vpack.c.bf16 %v145_v18, %v141_v17 }
  0x35   :  { %1207 = vmatprep.subr.bf16.mxu1 %v1206_v40  ;;  %298 = vmatprep.mubr.f32.mxu0 %v1579_v16  ;;  %v144_v26 = vld [vmem:[#allocation3 + $0x330] sm:$0xff]  ;;  %v147_v27 = vld [vmem:[#allocation3 + $0x348] sm:$0xff]  ;;  %v149_v29 = vld [vmem:[#allocation3 + $0x358] sm:$0xff]  ;;  %v1128_v31 = vpack.c.bf16 %v142_v23, %v138_v22 }
  0x36   :  { %440 = vmatprep.mubr.f32.mxu1 %v1579_v16  ;;  %v151_v28 = vld [vmem:[#allocation3 + $0x368] sm:$0xff]  ;;  %v153_v30 = vld [vmem:[#allocation3 + $0x378] sm:$0xff]  ;;  %v1224_v32 = vpack.c.bf16 %v144_v26, %v140_v24  ;;  %v146_v34 = vld [vmem:[#allocation3 + $0x340] sm:$0xff] }
  0x37   :  { %1113 = vmatpush1.bf16.msra.mxu0 %v1112_v46  ;;  %v1130_v33 = vpack.c.bf16 %v151_v28, %v147_v27  ;;  %v150_v35 = vld [vmem:[#allocation3 + $0x360] sm:$0xff]  ;;  %v148_v36 = vld [vmem:[#allocation3 + $0x350] sm:$0xff]  ;;  %v1226_v37 = vpack.c.bf16 %v153_v30, %v149_v29  ;;  %v155_v39 = vld [vmem:[#allocation3 + $0x388] sm:$0xff] }
  0x38   :  { %1209 = vmatpush1.bf16.msra.mxu1 %v1208_v47  ;;  %1115 = vmatprep.subr.bf16.mxu0 %v1114_v48  ;;  %v152_v38 = vld [vmem:[#allocation3 + $0x370] sm:$0xff]  ;;  %v159_v40 = vld [vmem:[#allocation3 + $0x3a8] sm:$0xff]  ;;  %v157_v41 = vld [vmem:[#allocation3 + $0x398] sm:$0xff]  ;;  %v1132_v43 = vpack.c.bf16 %v150_v35, %v146_v34 }
  0x39   :  { %1211 = vmatprep.subr.bf16.mxu1 %v1210_v52  ;;  %v161_v42 = vld [vmem:[#allocation3 + $0x3b8] sm:$0xff]  ;;  %v1228_v44 = vpack.c.bf16 %v152_v38, %v148_v36  ;;  %v1134_v45 = vpack.c.bf16 %v159_v40, %v155_v39  ;;  %v154_v46 = vld [vmem:[#allocation3 + $0x380] sm:$0xff]  ;;  %v156_v48 = vld [vmem:[#allocation3 + $0x390] sm:$0xff]  ;;  %v1533_v39 = vmov 0.0  }
  0x3a   :  { %v158_v47 = vld [vmem:[#allocation3 + $0x3a0] sm:$0xff]  ;;  %v1230_v49 = vpack.c.bf16 %v161_v42, %v157_v41  ;;  %v160_v50 = vld [vmem:[#allocation3 + $0x3b0] sm:$0xff]  ;;  %v163_v51 = vld [vmem:[#allocation3 + $0x3c8] sm:$0xff] }
  0x3b   :  { %1117 = vmatpush1.bf16.msra.mxu0 %v1116_v58  ;;  %v167_v52 = vld [vmem:[#allocation3 + $0x3e8] sm:$0xff]  ;;  %v165_v53 = vld [vmem:[#allocation3 + $0x3d8] sm:$0xff]  ;;  %v1136_v55 = vpack.c.bf16 %v158_v47, %v154_v46  ;;  %v1232_v56 = vpack.c.bf16 %v160_v50, %v156_v48  ;;  %v162_v58 = vld [vmem:[#allocation3 + $0x3c0] sm:$0xff] }
  0x3c   :  { %1213 = vmatpush1.bf16.msra.mxu1 %v1212_v59  ;;  %1119 = vmatprep.subr.bf16.mxu0 %v1118_v60  ;;  %v169_v54 = vld [vmem:[#allocation3 + $0x3f8] sm:$0xff]  ;;  %v1138_v57 = vpack.c.bf16 %v167_v52, %v163_v51  ;;  %v166_v59 = vld [vmem:[#allocation3 + $0x3e0] sm:$0xff]  ;;  %v164_v60 = vld [vmem:[#allocation3 + $0x3d0] sm:$0xff] }
  0x3d   :  { %1215 = vmatprep.subr.bf16.mxu1 %v1214_v0  ;;  %v1234_v61 = vpack.c.bf16 %v169_v54, %v165_v53  ;;  %v168_v62 = vld [vmem:[#allocation3 + $0x3f0] sm:$0xff]  ;;  %v171_v63 = vld [vmem:[#allocation3 + $0x408] sm:$0xff]  ;;  %v173_v1 = vld [vmem:[#allocation3 + $0x418] sm:$0xff]  ;;  %v1140_v3 = vpack.c.bf16 %v166_v59, %v162_v58 }
  0x3e   :  { %v175_v0 = vld [vmem:[#allocation3 + $0x428] sm:$0xff]  ;;  %v177_v2 = vld [vmem:[#allocation3 + $0x438] sm:$0xff]  ;;  %v1236_v4 = vpack.c.bf16 %v168_v62, %v164_v60  ;;  %v174_v7 = vld [vmem:[#allocation3 + $0x420] sm:$0xff] }
  0x3f   :  { %1121 = vmatpush1.bf16.msra.mxu0 %v1120_v6  ;;  %v1142_v5 = vpack.c.bf16 %v175_v0, %v171_v63  ;;  %v170_v6 = vld [vmem:[#allocation3 + $0x400] sm:$0xff]  ;;  %v176_v10 = vld [vmem:[#allocation3 + $0x430] sm:$0xff]  ;;  %v179_v11 = vld [vmem:[#allocation3 + $0x448] sm:$0xff] }
  0x40   :  { %1217 = vmatpush1.bf16.msra.mxu1 %v1216_v8  ;;  %1123 = vmatprep.subr.bf16.mxu0 %v1122_v9  ;;  %v172_v8 = vld [vmem:[#allocation3 + $0x410] sm:$0xff]  ;;  %v1238_v9 = vpack.c.bf16 %v177_v2, %v173_v1  ;;  %v183_v12 = vld [vmem:[#allocation3 + $0x468] sm:$0xff]  ;;  %v185_v14 = vld [vmem:[#allocation3 + $0x478] sm:$0xff]  ;;  %v1144_v17 = vpack.c.bf16 %v174_v7, %v170_v6 }
  0x41   :  { %1219 = vmatprep.subr.bf16.mxu1 %v1218_v13  ;;  %v181_v13 = vld [vmem:[#allocation3 + $0x458] sm:$0xff]  ;;  %v33_v15 = vld [vmem:[%s1616_s0] sm:$0xff]  ;;  %v1240_v18 = vpack.c.bf16 %v176_v10, %v172_v8  ;;  %v180_v22 = vld [vmem:[#allocation3 + $0x450] sm:$0xff] }
  0x42   :  { %v1242_v23 = vpack.c.bf16 %v185_v14, %v181_v13  ;;  %v184_v24 = vld [vmem:[#allocation3 + $0x470] sm:$0xff]  ;;  %v191_v26 = vld [vmem:[#allocation3 + $0x4a8] sm:$0xff]  ;;  %v189_v27 = vld [vmem:[#allocation3 + $0x498] sm:$0xff] }
  0x43   :  { %1125 = vmatpush1.bf16.msra.mxu0 %v1124_v19  ;;  %v1146_v19 = vpack.c.bf16 %v183_v12, %v179_v11  ;;  %v193_v28 = vld [vmem:[#allocation3 + $0x4b8] sm:$0xff]  ;;  %v1244_v30 = vpack.c.bf16 %v184_v24, %v180_v22  ;;  %v188_v34 = vld [vmem:[#allocation3 + $0x490] sm:$0xff]  ;;  %v199_v38 = vld [vmem:[#allocation3 + $0x4e8] sm:$0xff] }
  0x44   :  { %1221 = vmatpush1.bf16.msra.mxu1 %v1220_v20  ;;  %1127 = vmatprep.subr.bf16.mxu0 %v1126_v21  ;;  %v178_v20 = vld [vmem:[#allocation3 + $0x440] sm:$0xff]  ;;  %v1246_v35 = vpack.c.bf16 %v193_v28, %v189_v27  ;;  %v192_v36 = vld [vmem:[#allocation3 + $0x4b0] sm:$0xff]  ;;  %v197_v40 = vld [vmem:[#allocation3 + $0x4d8] sm:$0xff] }
  0x45   :  { %1223 = vmatprep.subr.bf16.mxu1 %v1222_v25  ;;  %v182_v21 = vld [vmem:[#allocation3 + $0x460] sm:$0xff]  ;;  %v187_v25 = vld [vmem:[#allocation3 + $0x488] sm:$0xff]  ;;  %v201_v41 = vld [vmem:[#allocation3 + $0x4f8] sm:$0xff] }
  0x46   :  { %v1148_v29 = vpack.c.bf16 %v182_v21, %v178_v20  ;;  %v198_v46 = vld [vmem:[#allocation3 + $0x4e0] sm:$0xff]  ;;  %v196_v47 = vld [vmem:[#allocation3 + $0x4d0] sm:$0xff]  ;;  %v1250_v48 = vpack.c.bf16 %v201_v41, %v197_v40  ;;  %v203_v50 = vld [vmem:[#allocation3 + $0x508] sm:$0xff] }
  0x47   :  { %1129 = vmatpush1.bf16.msra.mxu0 %v1128_v31  ;;  %v1150_v31 = vpack.c.bf16 %v191_v26, %v187_v25  ;;  %v207_v51 = vld [vmem:[#allocation3 + $0x528] sm:$0xff]  ;;  %v205_v52 = vld [vmem:[#allocation3 + $0x518] sm:$0xff]  ;;  %v206_v58 = vld [vmem:[#allocation3 + $0x520] sm:$0xff] }
  0x48   :  { %1225 = vmatpush1.bf16.msra.mxu1 %v1224_v32  ;;  %1131 = vmatprep.subr.bf16.mxu0 %v1130_v33  ;;  %v186_v32 = vld [vmem:[#allocation3 + $0x480] sm:$0xff]  ;;  %v209_v53 = vld [vmem:[#allocation3 + $0x538] sm:$0xff]  ;;  %v204_v59 = vld [vmem:[#allocation3 + $0x510] sm:$0xff] }
  0x49   :  { %1227 = vmatprep.subr.bf16.mxu1 %v1226_v37  ;;  %v190_v33 = vld [vmem:[#allocation3 + $0x4a0] sm:$0xff]  ;;  %v195_v37 = vld [vmem:[#allocation3 + $0x4c8] sm:$0xff]  ;;  %v1254_v60 = vpack.c.bf16 %v209_v53, %v205_v52  ;;  %v213_v0 = vld [vmem:[#allocation3 + $0x558] sm:$0xff] }
  0x4a   :  { %v1152_v42 = vpack.c.bf16 %v190_v33, %v186_v32  ;;  %v211_v62 = vld [vmem:[#allocation3 + $0x548] sm:$0xff]  ;;  %v217_v1 = vld [vmem:[#allocation3 + $0x578] sm:$0xff]  ;;  %v214_v6 = vld [vmem:[#allocation3 + $0x560] sm:$0xff] }
  0x4b   :  { %1133 = vmatpush1.bf16.msra.mxu0 %v1132_v43  ;;  %v1248_v43 = vpack.c.bf16 %v192_v36, %v188_v34  ;;  %v215_v63 = vld [vmem:[#allocation3 + $0x568] sm:$0xff]  ;;  %v212_v7 = vld [vmem:[#allocation3 + $0x550] sm:$0xff]  ;;  %v1258_v8 = vpack.c.bf16 %v217_v1, %v213_v0  ;;  %v221_v12 = vld [vmem:[#allocation3 + $0x598] sm:$0xff] }
  0x4c   :  { %1229 = vmatpush1.bf16.msra.mxu1 %v1228_v44  ;;  %1135 = vmatprep.subr.bf16.mxu0 %v1134_v45  ;;  %v1154_v44 = vpack.c.bf16 %v199_v38, %v195_v37  ;;  %v194_v45 = vld [vmem:[#allocation3 + $0x4c0] sm:$0xff]  ;;  %v219_v10 = vld [vmem:[#allocation3 + $0x588] sm:$0xff]  ;;  %v225_v13 = vld [vmem:[#allocation3 + $0x5b8] sm:$0xff] }
  0x4d   :  { %1231 = vmatprep.subr.bf16.mxu1 %v1230_v49  ;;  %v200_v49 = vld [vmem:[#allocation3 + $0x4f0] sm:$0xff]  ;;  %v1156_v54 = vpack.c.bf16 %v198_v46, %v194_v45  ;;  %v223_v11 = vld [vmem:[#allocation3 + $0x5a8] sm:$0xff]  ;;  %v1262_v21 = vpack.c.bf16 %v225_v13, %v221_v12  ;;  %v229_v25 = vld [vmem:[#allocation3 + $0x5d8] sm:$0xff] }
  0x4e   :  { %v220_v20 = vld [vmem:[#allocation3 + $0x590] sm:$0xff]  ;;  %v231_v24 = vld [vmem:[#allocation3 + $0x5e8] sm:$0xff]  ;;  %v233_v26 = vld [vmem:[#allocation3 + $0x5f8] sm:$0xff] }
  0x4f   :  { %1137 = vmatpush1.bf16.msra.mxu0 %v1136_v55  ;;  %v1252_v55 = vpack.c.bf16 %v200_v49, %v196_v47  ;;  %v224_v22 = vld [vmem:[#allocation3 + $0x5b0] sm:$0xff]  ;;  %v1266_v33 = vpack.c.bf16 %v233_v26, %v229_v25  ;;  %v558_v36 = vld [vmem:[#allocation3 + $0x628] sm:$0xff]  ;;  %v556_v37 = vld [vmem:[#allocation3 + $0x618] sm:$0xff] }
  0x50   :  { %1233 = vmatpush1.bf16.msra.mxu1 %v1232_v56  ;;  %1139 = vmatprep.subr.bf16.mxu0 %v1138_v57  ;;  %v1158_v56 = vpack.c.bf16 %v207_v51, %v203_v50  ;;  %v202_v57 = vld [vmem:[#allocation3 + $0x500] sm:$0xff]  ;;  %v1264_v28 = vpack.c.bf16 %v224_v22, %v220_v20  ;;  %v228_v32 = vld [vmem:[#allocation3 + $0x5d0] sm:$0xff]  ;;  %v560_v38 = vld [vmem:[#allocation3 + $0x638] sm:$0xff] }
  0x51   :  { %1235 = vmatprep.subr.bf16.mxu1 %v1234_v61  ;;  %v208_v61 = vld [vmem:[#allocation3 + $0x530] sm:$0xff]  ;;  %v1160_v2 = vpack.c.bf16 %v206_v58, %v202_v57  ;;  %v1366_v46 = vpack.c.bf16 %v560_v38, %v556_v37  ;;  %v566_v49 = vld [vmem:[#allocation3 + $0x668] sm:$0xff]  ;;  %v564_v50 = vld [vmem:[#allocation3 + $0x658] sm:$0xff] }
  0x52   :  { %v232_v34 = vld [vmem:[#allocation3 + $0x5f0] sm:$0xff]  ;;  %v568_v51 = vld [vmem:[#allocation3 + $0x678] sm:$0xff]  ;;  %v37_v52 = vld [vmem:[%s1617_s1] sm:$0xff] }
  0x53   :  { %1141 = vmatpush1.bf16.msra.mxu0 %v1140_v3  ;;  %v1256_v3 = vpack.c.bf16 %v208_v61, %v204_v59  ;;  %v1268_v41 = vpack.c.bf16 %v232_v34, %v228_v32  ;;  %v555_v45 = vld [vmem:[#allocation3 + $0x610] sm:$0xff]  ;;  %v565_v57 = vld [vmem:[#allocation3 + $0x660] sm:$0xff]  ;;  %v1370_v59 = vpack.c.bf16 %v568_v51, %v564_v50  ;;  %v570_v61 = vld [vmem:[#allocation3 + $0x688] sm:$0xff] }
  0x54   :  { %1237 = vmatpush1.bf16.msra.mxu1 %v1236_v4  ;;  %1143 = vmatprep.subr.bf16.mxu0 %v1142_v5  ;;  %v1162_v4 = vpack.c.bf16 %v215_v63, %v211_v62  ;;  %v210_v5 = vld [vmem:[#allocation3 + $0x540] sm:$0xff]  ;;  %v559_v47 = vld [vmem:[#allocation3 + $0x630] sm:$0xff]  ;;  %v574_v62 = vld [vmem:[#allocation3 + $0x6a8] sm:$0xff] }
  0x55   :  { %1239 = vmatprep.subr.bf16.mxu1 %v1238_v9  ;;  %v216_v9 = vld [vmem:[#allocation3 + $0x570] sm:$0xff]  ;;  %v1164_v14 = vpack.c.bf16 %v214_v6, %v210_v5  ;;  %v572_v63 = vld [vmem:[#allocation3 + $0x698] sm:$0xff]  ;;  %v573_v5 = vld [vmem:[#allocation3 + $0x6a0] sm:$0xff] }
  0x56   :  { %299 = vmatmul.mubr.f32.vlgmr.msra.gmra.mrb[0].mxu0 %v33_v15  ;;  %v563_v58 = vld [vmem:[#allocation3 + $0x650] sm:$0xff]  ;;  %v576_v0 = vld [vmem:[#allocation3 + $0x6b8] sm:$0xff]  ;;  %v586_v22 = vld [vmem:[#allocation3 + $0x708] sm:$0xff] }
  0x57   :  { %1145 = vmatpush1.bf16.msra.mxu0 %v1144_v17  ;;  %441 = vmatmul.mubr.f32.vlgmr.msra.gmra.mrb[0].mxu1 %v33_v15  ;;  %v1260_v15 = vpack.c.bf16 %v216_v9, %v212_v7  ;;  %v1166_v17 = vpack.c.bf16 %v223_v11, %v219_v10  ;;  %v571_v6 = vld [vmem:[#allocation3 + $0x690] sm:$0xff]  ;;  %v1374_v7 = vpack.c.bf16 %v576_v0, %v572_v63  ;;  %v578_v9 = vld [vmem:[#allocation3 + $0x6c8] sm:$0xff]  ;;  %v580_v11 = vld [vmem:[#allocation3 + $0x6d8] sm:$0xff] }
  0x58   :  { %1241 = vmatpush1.bf16.msra.mxu1 %v1240_v18  ;;  %1147 = vmatprep.subr.bf16.mxu0 %v1146_v19  ;;  %v218_v18 = vld [vmem:[#allocation3 + $0x580] sm:$0xff]  ;;  %v582_v10 = vld [vmem:[#allocation3 + $0x6e8] sm:$0xff]  ;;  %v584_v12 = vld [vmem:[#allocation3 + $0x6f8] sm:$0xff] }
  0x59   :  { %1243 = vmatprep.subr.bf16.mxu1 %v1242_v23  ;;  %369 = vmatprep.mubr.f32.mxu0 %v1533_v39  ;;  %v222_v19 = vld [vmem:[#allocation3 + $0x5a0] sm:$0xff]  ;;  %v227_v23 = vld [vmem:[#allocation3 + $0x5c8] sm:$0xff]  ;;  %v1378_v20 = vpack.c.bf16 %v584_v12, %v580_v11  ;;  %v592_v25 = vld [vmem:[#allocation3 + $0x738] sm:$0xff] }
  0x5a   :  { %511 = vmatprep.mubr.f32.mxu1 %v1533_v39  ;;  %v1168_v27 = vpack.c.bf16 %v222_v19, %v218_v18  ;;  %v581_v18 = vld [vmem:[#allocation3 + $0x6e0] sm:$0xff]  ;;  %v579_v19 = vld [vmem:[#allocation3 + $0x6d0] sm:$0xff]  ;;  %v596_v37 = vld [vmem:[#allocation3 + $0x758] sm:$0xff] }
  0x5b   :  { %1149 = vmatpush1.bf16.msra.mxu0 %v1148_v29  ;;  %v1170_v29 = vpack.c.bf16 %v231_v24, %v227_v23  ;;  %v590_v23 = vld [vmem:[#allocation3 + $0x728] sm:$0xff]  ;;  %v588_v24 = vld [vmem:[#allocation3 + $0x718] sm:$0xff]  ;;  %v591_v32 = vld [vmem:[#allocation3 + $0x730] sm:$0xff] }
  0x5c   :  { %1245 = vmatpush1.bf16.msra.mxu1 %v1244_v30  ;;  %1151 = vmatprep.subr.bf16.mxu0 %v1150_v31  ;;  %v226_v30 = vld [vmem:[#allocation3 + $0x5c0] sm:$0xff]  ;;  %v604_v50 = vld [vmem:[#allocation3 + $0x798] sm:$0xff] }
  0x5d   :  { %1247 = vmatprep.subr.bf16.mxu1 %v1246_v35  ;;  %v230_v31 = vld [vmem:[#allocation3 + $0x5e0] sm:$0xff]  ;;  %v554_v35 = vld [vmem:[#allocation3 + $0x608] sm:$0xff]  ;;  %v616_v0 = vld [vmem:[#allocation3 + $0x7f8] sm:$0xff] }
  0x5e   :  { %v1172_v40 = vpack.c.bf16 %v230_v31, %v226_v30  ;;  %v1382_v30 = vpack.c.bf16 %v592_v25, %v588_v24  ;;  %v587_v31 = vld [vmem:[#allocation3 + $0x710] sm:$0xff]  ;;  %v624_v12 = vld [vmem:[#allocation3 + $0x838] sm:$0xff] }
  0x5f   :  { %1153 = vmatpush1.bf16.msra.mxu0 %v1152_v42  ;;  %v1270_v42 = vpack.c.bf16 %v558_v36, %v554_v35  ;;  %v1384_v34 = vpack.c.bf16 %v591_v32, %v587_v31  ;;  %v594_v35 = vld [vmem:[#allocation3 + $0x748] sm:$0xff]  ;;  %v632_v25 = vld [vmem:[#allocation3 + $0x878] sm:$0xff] }
  0x60   :  { %1249 = vmatpush1.bf16.msra.mxu1 %v1248_v43  ;;  %1155 = vmatprep.subr.bf16.mxu0 %v1154_v44  ;;  %v553_v43 = vld [vmem:[#allocation3 + $0x600] sm:$0xff]  ;;  %v598_v36 = vld [vmem:[#allocation3 + $0x768] sm:$0xff] }
  0x61   :  { %1251 = vmatprep.subr.bf16.mxu1 %v1250_v48  ;;  %v557_v44 = vld [vmem:[#allocation3 + $0x620] sm:$0xff]  ;;  %v562_v48 = vld [vmem:[#allocation3 + $0x648] sm:$0xff]  ;;  %v1290_v38 = vpack.c.bf16 %v598_v36, %v594_v35  ;;  %v640_v36 = vld [vmem:[#allocation3 + $0x8b8] sm:$0xff] }
  0x62   :  { %v1272_v53 = vpack.c.bf16 %v557_v44, %v553_v43  ;;  %v634_v32 = vld [vmem:[#allocation3 + $0x888] sm:$0xff] }
  0x63   :  { %1157 = vmatpush1.bf16.msra.mxu0 %v1156_v54  ;;  %v1368_v54 = vpack.c.bf16 %v559_v47, %v555_v45  ;;  %v595_v45 = vld [vmem:[#allocation3 + $0x750] sm:$0xff] }
  0x64   :  { %1253 = vmatpush1.bf16.msra.mxu1 %v1252_v55  ;;  %1159 = vmatprep.subr.bf16.mxu0 %v1158_v56  ;;  %v1274_v55 = vpack.c.bf16 %v566_v49, %v562_v48  ;;  %v561_v56 = vld [vmem:[#allocation3 + $0x640] sm:$0xff]  ;;  %v602_v48 = vld [vmem:[#allocation3 + $0x788] sm:$0xff] }
  0x65   :  { %1255 = vmatprep.subr.bf16.mxu1 %v1254_v60  ;;  %v567_v60 = vld [vmem:[#allocation3 + $0x670] sm:$0xff]  ;;  %v1276_v1 = vpack.c.bf16 %v565_v57, %v561_v56  ;;  %v606_v49 = vld [vmem:[#allocation3 + $0x7a8] sm:$0xff] }
  0x66   :  { %v1294_v51 = vpack.c.bf16 %v606_v49, %v602_v48  ;;  %v603_v57 = vld [vmem:[#allocation3 + $0x790] sm:$0xff]  ;;  %v648_v49 = vld [vmem:[#allocation3 + $0x8f8] sm:$0xff] }
  0x67   :  { %1161 = vmatpush1.bf16.msra.mxu0 %v1160_v2  ;;  %v1372_v2 = vpack.c.bf16 %v567_v60, %v563_v58  ;;  %v607_v58 = vld [vmem:[#allocation3 + $0x7b0] sm:$0xff]  ;;  %v610_v60 = vld [vmem:[#allocation3 + $0x7c8] sm:$0xff] }
  0x68   :  { %1257 = vmatpush1.bf16.msra.mxu1 %v1256_v3  ;;  %1163 = vmatprep.subr.bf16.mxu0 %v1162_v4  ;;  %v1278_v3 = vpack.c.bf16 %v574_v62, %v570_v61  ;;  %v569_v4 = vld [vmem:[#allocation3 + $0x680] sm:$0xff]  ;;  %v614_v61 = vld [vmem:[#allocation3 + $0x7e8] sm:$0xff]  ;;  %v612_v62 = vld [vmem:[#allocation3 + $0x7d8] sm:$0xff] }
  0x69   :  { %1259 = vmatprep.subr.bf16.mxu1 %v1258_v8  ;;  %v575_v8 = vld [vmem:[#allocation3 + $0x6b0] sm:$0xff]  ;;  %v1280_v13 = vpack.c.bf16 %v573_v5, %v569_v4  ;;  %v1298_v63 = vpack.c.bf16 %v614_v61, %v610_v60  ;;  %v656_v61 = vld [vmem:[#allocation3 + $0x938] sm:$0xff] }
  0x6a   :  { %v611_v5 = vld [vmem:[#allocation3 + $0x7d0] sm:$0xff] }
  0x6b   :  { %1165 = vmatpush1.bf16.msra.mxu0 %v1164_v14  ;;  %v1376_v14 = vpack.c.bf16 %v575_v8, %v571_v6  ;;  %v615_v6 = vld [vmem:[#allocation3 + $0x7f0] sm:$0xff]  ;;  %v618_v8 = vld [vmem:[#allocation3 + $0x808] sm:$0xff] }
  0x6c   :  { %1261 = vmatpush1.bf16.msra.mxu1 %v1260_v15  ;;  %1167 = vmatprep.subr.bf16.mxu0 %v1166_v17  ;;  %v1282_v15 = vpack.c.bf16 %v582_v10, %v578_v9  ;;  %v577_v17 = vld [vmem:[#allocation3 + $0x6c0] sm:$0xff]  ;;  %v622_v9 = vld [vmem:[#allocation3 + $0x828] sm:$0xff]  ;;  %v620_v10 = vld [vmem:[#allocation3 + $0x818] sm:$0xff] }
  0x6d   :  { %1263 = vmatprep.subr.bf16.mxu1 %v1262_v21  ;;  %v583_v21 = vld [vmem:[#allocation3 + $0x6f0] sm:$0xff]  ;;  %v1284_v26 = vpack.c.bf16 %v581_v18, %v577_v17  ;;  %v1302_v11 = vpack.c.bf16 %v622_v9, %v618_v8  ;;  %v664_v9 = vld [vmem:[#allocation3 + $0x978] sm:$0xff] }
  0x6e   :  { %v619_v18 = vld [vmem:[#allocation3 + $0x810] sm:$0xff] }
  0x6f   :  { %1169 = vmatpush1.bf16.msra.mxu0 %v1168_v27  ;;  %v1286_v27 = vpack.c.bf16 %v590_v23, %v586_v22  ;;  %v630_v22 = vld [vmem:[#allocation3 + $0x868] sm:$0xff]  ;;  %v628_v23 = vld [vmem:[#allocation3 + $0x858] sm:$0xff] }
  0x70   :  { %1265 = vmatpush1.bf16.msra.mxu1 %v1264_v28  ;;  %1171 = vmatprep.subr.bf16.mxu0 %v1170_v29  ;;  %v585_v28 = vld [vmem:[#allocation3 + $0x700] sm:$0xff] }
  0x71   :  { %1267 = vmatprep.subr.bf16.mxu1 %v1266_v33  ;;  %v589_v29 = vld [vmem:[#allocation3 + $0x720] sm:$0xff] }
  0x72   :  { %v1288_v33 = vpack.c.bf16 %v589_v29, %v585_v28  ;;  %v627_v29 = vld [vmem:[#allocation3 + $0x850] sm:$0xff] }
  0x73   :  { %1173 = vmatpush1.bf16.msra.mxu0 %v1172_v40  ;;  %v600_v40 = vld [vmem:[#allocation3 + $0x778] sm:$0xff] }
  0x74   :  { %1269 = vmatpush1.bf16.msra.mxu1 %v1268_v41  ;;  %1271 = vmatprep.subr.bf16.mxu0 %v1270_v42  ;;  %v593_v41 = vld [vmem:[#allocation3 + $0x740] sm:$0xff]  ;;  %v1386_v43 = vpack.c.bf16 %v600_v40, %v596_v37 }
  0x75   :  { %1367 = vmatprep.subr.bf16.mxu1 %v1366_v46  ;;  %v597_v42 = vld [vmem:[#allocation3 + $0x760] sm:$0xff]  ;;  %v599_v46 = vld [vmem:[#allocation3 + $0x770] sm:$0xff] }
  0x76   :  { %370 = vmatmul.mubr.f32.vlgmr.msra.gmra.mrb[0].mxu0 %v37_v52  ;;  %v1292_v44 = vpack.c.bf16 %v597_v42, %v593_v41  ;;  %v1388_v47 = vpack.c.bf16 %v599_v46, %v595_v45  ;;  %v633_v37 = vld [vmem:[#allocation3 + $0x880] sm:$0xff]  ;;  %v635_v42 = vld [vmem:[#allocation3 + $0x890] sm:$0xff]  ;;  %v642_v45 = vld [vmem:[#allocation3 + $0x8c8] sm:$0xff] }
  0x77   :  { %512 = vmatmul.mubr.f32.vlgmr.msra.gmra.mrb[0].mxu1 %v37_v52  ;;  %1273 = vmatpush1.bf16.msra.mxu0 %v1272_v53  ;;  %v608_v52 = vld [vmem:[#allocation3 + $0x7b8] sm:$0xff]  ;;  %v601_v53 = vld [vmem:[#allocation3 + $0x780] sm:$0xff]  ;;  %v646_v46 = vld [vmem:[#allocation3 + $0x8e8] sm:$0xff] }
  0x78   :  { %1369 = vmatpush1.bf16.msra.mxu1 %v1368_v54  ;;  %1275 = vmatprep.subr.bf16.mxu0 %v1274_v55  ;;  %v605_v54 = vld [vmem:[#allocation3 + $0x7a0] sm:$0xff]  ;;  %v1390_v55 = vpack.c.bf16 %v608_v52, %v604_v50  ;;  %v1314_v48 = vpack.c.bf16 %v646_v46, %v642_v45  ;;  %v688_v45 = vld [vmem:[#allocation3 + $0xa38] sm:$0xff] }
  0x79   :  { %1371 = vmatprep.subr.bf16.mxu1 %v1370_v59  ;;  %809 = vmatprep.mubr.f32.mxu0 %v1579_v16  ;;  %v1296_v56 = vpack.c.bf16 %v605_v54, %v601_v53  ;;  %v1392_v59 = vpack.c.bf16 %v607_v58, %v603_v57  ;;  %v641_v50 = vld [vmem:[#allocation3 + $0x8c0] sm:$0xff]  ;;  %v643_v54 = vld [vmem:[#allocation3 + $0x8d0] sm:$0xff]  ;;  %v650_v57 = vld [vmem:[#allocation3 + $0x908] sm:$0xff] }
  0x7a   :  { %951 = vmatprep.mubr.f32.mxu1 %v1579_v16  ;;  %v1380_v16 = vpack.c.bf16 %v583_v21, %v579_v19  ;;  %v623_v19 = vld [vmem:[#allocation3 + $0x830] sm:$0xff]  ;;  %v626_v21 = vld [vmem:[#allocation3 + $0x848] sm:$0xff] }
  0x7b   :  { %1277 = vmatpush1.bf16.msra.mxu0 %v1276_v1  ;;  %v609_v1 = vld [vmem:[#allocation3 + $0x7c0] sm:$0xff]  ;;  %v1306_v24 = vpack.c.bf16 %v630_v22, %v626_v21  ;;  %v654_v58 = vld [vmem:[#allocation3 + $0x928] sm:$0xff]  ;;  %v672_v21 = vld [vmem:[#allocation3 + $0x9b8] sm:$0xff] }
  0x7c   :  { %1373 = vmatpush1.bf16.msra.mxu1 %v1372_v2  ;;  %1279 = vmatprep.subr.bf16.mxu0 %v1278_v3  ;;  %v613_v2 = vld [vmem:[#allocation3 + $0x7e0] sm:$0xff]  ;;  %v1394_v3 = vpack.c.bf16 %v616_v0, %v612_v62  ;;  %v1318_v60 = vpack.c.bf16 %v654_v58, %v650_v57 }
  0x7d   :  { %1375 = vmatprep.subr.bf16.mxu1 %v1374_v7  ;;  %v1300_v4 = vpack.c.bf16 %v613_v2, %v609_v1  ;;  %v1396_v7 = vpack.c.bf16 %v615_v6, %v611_v5  ;;  %v649_v62 = vld [vmem:[#allocation3 + $0x900] sm:$0xff]  ;;  %v651_v1 = vld [vmem:[#allocation3 + $0x910] sm:$0xff]  ;;  %v658_v5 = vld [vmem:[#allocation3 + $0x948] sm:$0xff] }
  0x7e   :  { %v653_v0 = vld [vmem:[#allocation3 + $0x920] sm:$0xff]  ;;  %v655_v2 = vld [vmem:[#allocation3 + $0x930] sm:$0xff]  ;;  %v662_v6 = vld [vmem:[#allocation3 + $0x968] sm:$0xff] }
  0x7f   :  { %1281 = vmatpush1.bf16.msra.mxu0 %v1280_v13  ;;  %v617_v13 = vld [vmem:[#allocation3 + $0x800] sm:$0xff]  ;;  %v1322_v8 = vpack.c.bf16 %v662_v6, %v658_v5  ;;  %v683_v6 = vld [vmem:[#allocation3 + $0xa10] sm:$0xff] }
  0x80   :  { %1377 = vmatpush1.bf16.msra.mxu1 %v1376_v14  ;;  %1283 = vmatprep.subr.bf16.mxu0 %v1282_v15  ;;  %v621_v14 = vld [vmem:[#allocation3 + $0x820] sm:$0xff]  ;;  %v1398_v15 = vpack.c.bf16 %v624_v12, %v620_v10 }
  0x81   :  { %1379 = vmatprep.subr.bf16.mxu1 %v1378_v20  ;;  %v1304_v17 = vpack.c.bf16 %v621_v14, %v617_v13  ;;  %v1400_v20 = vpack.c.bf16 %v623_v19, %v619_v18  ;;  %v657_v10 = vld [vmem:[#allocation3 + $0x940] sm:$0xff]  ;;  %v659_v14 = vld [vmem:[#allocation3 + $0x950] sm:$0xff]  ;;  %v670_v19 = vld [vmem:[#allocation3 + $0x9a8] sm:$0xff] }
  0x82   :  { %v685_v5 = vld [vmem:[#allocation3 + $0xa20] sm:$0xff] }
  0x83   :  { %1285 = vmatpush1.bf16.msra.mxu0 %v1284_v26  ;;  %v625_v26 = vld [vmem:[#allocation3 + $0x840] sm:$0xff] }
  0x84   :  { %1381 = vmatpush1.bf16.msra.mxu1 %v1380_v16  ;;  %1287 = vmatprep.subr.bf16.mxu0 %v1286_v27  ;;  %v629_v16 = vld [vmem:[#allocation3 + $0x860] sm:$0xff]  ;;  %v1402_v27 = vpack.c.bf16 %v632_v25, %v628_v23 }
  0x85   :  { %1383 = vmatprep.subr.bf16.mxu1 %v1382_v30  ;;  %v1308_v28 = vpack.c.bf16 %v629_v16, %v625_v26  ;;  %v631_v30 = vld [vmem:[#allocation3 + $0x870] sm:$0xff]  ;;  %v669_v25 = vld [vmem:[#allocation3 + $0x9a0] sm:$0xff] }
  0x86   :  { %v1404_v31 = vpack.c.bf16 %v631_v30, %v627_v29  ;;  %v667_v26 = vld [vmem:[#allocation3 + $0x990] sm:$0xff]  ;;  %v678_v29 = vld [vmem:[#allocation3 + $0x9e8] sm:$0xff] }
  0x87   :  { %1289 = vmatpush1.bf16.msra.mxu0 %v1288_v33  ;;  %v638_v33 = vld [vmem:[#allocation3 + $0x8a8] sm:$0xff] }
  0x88   :  { %1385 = vmatpush1.bf16.msra.mxu1 %v1384_v34  ;;  %1291 = vmatprep.subr.bf16.mxu0 %v1290_v38  ;;  %v636_v34 = vld [vmem:[#allocation3 + $0x898] sm:$0xff]  ;;  %v1310_v35 = vpack.c.bf16 %v638_v33, %v634_v32  ;;  %v637_v38 = vld [vmem:[#allocation3 + $0x8a0] sm:$0xff] }
  0x89   :  { %1387 = vmatprep.subr.bf16.mxu1 %v1386_v43  ;;  %v1406_v40 = vpack.c.bf16 %v640_v36, %v636_v34  ;;  %v1312_v41 = vpack.c.bf16 %v637_v38, %v633_v37  ;;  %v639_v43 = vld [vmem:[#allocation3 + $0x8b0] sm:$0xff]  ;;  %v676_v32 = vld [vmem:[#allocation3 + $0x9d8] sm:$0xff]  ;;  %v673_v34 = vld [vmem:[#allocation3 + $0x9c0] sm:$0xff] }
  0x8a   :  { %v680_v33 = vld [vmem:[#allocation3 + $0x9f8] sm:$0xff]  ;;  %v677_v36 = vld [vmem:[#allocation3 + $0x9e0] sm:$0xff]  ;;  %v675_v37 = vld [vmem:[#allocation3 + $0x9d0] sm:$0xff] }
  0x8b   :  { %1293 = vmatpush1.bf16.msra.mxu0 %v1292_v44  ;;  %v1408_v44 = vpack.c.bf16 %v639_v43, %v635_v42  ;;  %v679_v38 = vld [vmem:[#allocation3 + $0x9f0] sm:$0xff]  ;;  %v684_v42 = vld [vmem:[#allocation3 + $0xa18] sm:$0xff]  ;;  %v1332_v43 = vpack.c.bf16 %v677_v36, %v673_v34  ;;  %v710_v36 = vld [vmem:[#allocation3 + $0xae8] sm:$0xff] }
  0x8c   :  { %1389 = vmatpush1.bf16.msra.mxu1 %v1388_v47  ;;  %1295 = vmatprep.subr.bf16.mxu0 %v1294_v51  ;;  %v644_v47 = vld [vmem:[#allocation3 + $0x8d8] sm:$0xff]  ;;  %v645_v51 = vld [vmem:[#allocation3 + $0x8e0] sm:$0xff]  ;;  %v703_v34 = vld [vmem:[#allocation3 + $0xab0] sm:$0xff] }
  0x8d   :  { %1391 = vmatprep.subr.bf16.mxu1 %v1390_v55  ;;  %v1410_v52 = vpack.c.bf16 %v648_v49, %v644_v47  ;;  %v1316_v53 = vpack.c.bf16 %v645_v51, %v641_v50  ;;  %v647_v55 = vld [vmem:[#allocation3 + $0x8f0] sm:$0xff]  ;;  %v1430_v47 = vpack.c.bf16 %v688_v45, %v684_v42  ;;  %v705_v42 = vld [vmem:[#allocation3 + $0xac0] sm:$0xff] }
  0x8f   :  { %1297 = vmatpush1.bf16.msra.mxu0 %v1296_v56  ;;  %v1412_v56 = vpack.c.bf16 %v647_v55, %v643_v54 }
  0x90   :  { %1393 = vmatpush1.bf16.msra.mxu1 %v1392_v59  ;;  %1299 = vmatprep.subr.bf16.mxu0 %v1298_v63  ;;  %v652_v59 = vld [vmem:[#allocation3 + $0x918] sm:$0xff] }
  0x91   :  { %1395 = vmatprep.subr.bf16.mxu1 %v1394_v3  ;;  %v1414_v63 = vpack.c.bf16 %v656_v61, %v652_v59  ;;  %v1320_v3 = vpack.c.bf16 %v653_v0, %v649_v62  ;;  %v537_v61 = vld [vmem:[%s1618_s2] sm:$0xff] }
  0x93   :  { %1301 = vmatpush1.bf16.msra.mxu0 %v1300_v4  ;;  %v1416_v4 = vpack.c.bf16 %v655_v2, %v651_v1 }
  0x94   :  { %1397 = vmatpush1.bf16.msra.mxu1 %v1396_v7  ;;  %1303 = vmatprep.subr.bf16.mxu0 %v1302_v11  ;;  %v660_v7 = vld [vmem:[#allocation3 + $0x958] sm:$0xff]  ;;  %v661_v11 = vld [vmem:[#allocation3 + $0x960] sm:$0xff] }
  0x95   :  { %1399 = vmatprep.subr.bf16.mxu1 %v1398_v15  ;;  %v1418_v12 = vpack.c.bf16 %v664_v9, %v660_v7  ;;  %v1324_v13 = vpack.c.bf16 %v661_v11, %v657_v10  ;;  %v663_v15 = vld [vmem:[#allocation3 + $0x970] sm:$0xff]  ;;  %v694_v9 = vld [vmem:[#allocation3 + $0xa68] sm:$0xff]  ;;  %v692_v10 = vld [vmem:[#allocation3 + $0xa58] sm:$0xff] }
  0x96   :  { %v1420_v18 = vpack.c.bf16 %v663_v15, %v659_v14  ;;  %v687_v7 = vld [vmem:[#allocation3 + $0xa30] sm:$0xff]  ;;  %v696_v11 = vld [vmem:[#allocation3 + $0xa78] sm:$0xff] }
  0x97   :  { %1305 = vmatpush1.bf16.msra.mxu0 %v1304_v17  ;;  %v666_v17 = vld [vmem:[#allocation3 + $0x988] sm:$0xff]  ;;  %v1432_v15 = vpack.c.bf16 %v687_v7, %v683_v6  ;;  %v727_v6 = vld [vmem:[#allocation3 + $0xb70] sm:$0xff] }
  0x98   :  { %1401 = vmatpush1.bf16.msra.mxu1 %v1400_v20  ;;  %1307 = vmatprep.subr.bf16.mxu0 %v1306_v24  ;;  %v668_v20 = vld [vmem:[#allocation3 + $0x998] sm:$0xff]  ;;  %v1326_v22 = vpack.c.bf16 %v670_v19, %v666_v17  ;;  %v665_v24 = vld [vmem:[#allocation3 + $0x980] sm:$0xff]  ;;  %v730_v7 = vld [vmem:[#allocation3 + $0xb88] sm:$0xff] }
  0x99   :  { %1403 = vmatprep.subr.bf16.mxu1 %v1402_v27  ;;  %v1422_v23 = vpack.c.bf16 %v672_v21, %v668_v20  ;;  %v1328_v16 = vpack.c.bf16 %v669_v25, %v665_v24  ;;  %v671_v27 = vld [vmem:[#allocation3 + $0x9b0] sm:$0xff]  ;;  %v689_v17 = vld [vmem:[#allocation3 + $0xa40] sm:$0xff]  ;;  %v1434_v21 = vpack.c.bf16 %v696_v11, %v692_v10  ;;  %v698_v24 = vld [vmem:[#allocation3 + $0xa88] sm:$0xff] }
  0x9a   :  { %v1424_v30 = vpack.c.bf16 %v671_v27, %v667_v26  ;;  %v702_v25 = vld [vmem:[#allocation3 + $0xaa8] sm:$0xff]  ;;  %v700_v26 = vld [vmem:[#allocation3 + $0xa98] sm:$0xff] }
  0x9b   :  { %1309 = vmatpush1.bf16.msra.mxu0 %v1308_v28  ;;  %v674_v28 = vld [vmem:[#allocation3 + $0x9c8] sm:$0xff]  ;;  %v736_v10 = vld [vmem:[#allocation3 + $0xbb8] sm:$0xff] }
  0x9c   :  { %1405 = vmatpush1.bf16.msra.mxu1 %v1404_v31  ;;  %1311 = vmatprep.subr.bf16.mxu0 %v1310_v35  ;;  %v1330_v31 = vpack.c.bf16 %v678_v29, %v674_v28  ;;  %v1426_v35 = vpack.c.bf16 %v680_v33, %v676_v32  ;;  %v697_v29 = vld [vmem:[#allocation3 + $0xa80] sm:$0xff]  ;;  %v699_v33 = vld [vmem:[#allocation3 + $0xa90] sm:$0xff] }
  0x9d   :  { %1407 = vmatprep.subr.bf16.mxu1 %v1406_v40  ;;  %v682_v40 = vld [vmem:[#allocation3 + $0xa08] sm:$0xff] }
  0x9f   :  { %1313 = vmatpush1.bf16.msra.mxu0 %v1312_v41  ;;  %v686_v41 = vld [vmem:[#allocation3 + $0xa28] sm:$0xff] }
  0xa0   :  { %1409 = vmatpush1.bf16.msra.mxu1 %v1408_v44  ;;  %1315 = vmatprep.subr.bf16.mxu0 %v1314_v48  ;;  %v1428_v44 = vpack.c.bf16 %v679_v38, %v675_v37  ;;  %v1334_v46 = vpack.c.bf16 %v686_v41, %v682_v40  ;;  %v708_v37 = vld [vmem:[#allocation3 + $0xad8] sm:$0xff]  ;;  %v1440_v41 = vpack.c.bf16 %v703_v34, %v699_v33 }
  0xa1   :  { %1411 = vmatprep.subr.bf16.mxu1 %v1410_v52  ;;  %v712_v38 = vld [vmem:[#allocation3 + $0xaf8] sm:$0xff] }
  0xa2   :  { %v1442_v45 = vpack.c.bf16 %v712_v38, %v708_v37 }
  0xa3   :  { %1317 = vmatpush1.bf16.msra.mxu0 %v1316_v53 }
  0xa4   :  { %1413 = vmatpush1.bf16.msra.mxu1 %v1412_v56  ;;  %1319 = vmatprep.subr.bf16.mxu0 %v1318_v60 }
  0xa5   :  { %1415 = vmatprep.subr.bf16.mxu1 %v1414_v63 }
  0xa7   :  { %1321 = vmatpush1.bf16.msra.mxu0 %v1320_v3 }
  0xa8   :  { %1417 = vmatpush1.bf16.msra.mxu1 %v1416_v4  ;;  %1323 = vmatprep.subr.bf16.mxu0 %v1322_v8  ;;  %v681_v4 = vld [vmem:[#allocation3 + $0xa00] sm:$0xff]  ;;  %v690_v8 = vld [vmem:[#allocation3 + $0xa48] sm:$0xff] }
  0xa9   :  { %1419 = vmatprep.subr.bf16.mxu1 %v1418_v12  ;;  %v1336_v14 = vpack.c.bf16 %v685_v5, %v681_v4  ;;  %v1338_v20 = vpack.c.bf16 %v694_v9, %v690_v8  ;;  %v723_v5 = vld [vmem:[#allocation3 + $0xb50] sm:$0xff]  ;;  %v734_v8 = vld [vmem:[#allocation3 + $0xba8] sm:$0xff]  ;;  %v732_v9 = vld [vmem:[#allocation3 + $0xb98] sm:$0xff] }
  0xab   :  { %1325 = vmatpush1.bf16.msra.mxu0 %v1324_v13 }
  0xac   :  { %1421 = vmatpush1.bf16.msra.mxu1 %v1420_v18  ;;  %1327 = vmatprep.subr.bf16.mxu0 %v1326_v22  ;;  %v693_v18 = vld [vmem:[#allocation3 + $0xa60] sm:$0xff]  ;;  %v691_v22 = vld [vmem:[#allocation3 + $0xa50] sm:$0xff] }
  0xad   :  { %1423 = vmatprep.subr.bf16.mxu1 %v1422_v23  ;;  %v695_v23 = vld [vmem:[#allocation3 + $0xa70] sm:$0xff]  ;;  %v1340_v27 = vpack.c.bf16 %v693_v18, %v689_v17  ;;  %v1454_v17 = vpack.c.bf16 %v736_v10, %v732_v9 }
  0xae   :  { %v1436_v28 = vpack.c.bf16 %v695_v23, %v691_v22  ;;  %v731_v18 = vld [vmem:[#allocation3 + $0xb90] sm:$0xff]  ;;  %v740_v22 = vld [vmem:[#allocation3 + $0xbd8] sm:$0xff] }
  0xaf   :  { %1329 = vmatpush1.bf16.msra.mxu0 %v1328_v16  ;;  %v704_v16 = vld [vmem:[#allocation3 + $0xab8] sm:$0xff] }
  0xb0   :  { %1425 = vmatpush1.bf16.msra.mxu1 %v1424_v30  ;;  %1331 = vmatprep.subr.bf16.mxu0 %v1330_v31  ;;  %v701_v30 = vld [vmem:[#allocation3 + $0xaa0] sm:$0xff]  ;;  %v1342_v31 = vpack.c.bf16 %v702_v25, %v698_v24  ;;  %v1438_v32 = vpack.c.bf16 %v704_v16, %v700_v26  ;;  %v744_v23 = vld [vmem:[#allocation3 + $0xbf8] sm:$0xff] }
  0xb1   :  { %1427 = vmatprep.subr.bf16.mxu1 %v1426_v35  ;;  %v706_v35 = vld [vmem:[#allocation3 + $0xac8] sm:$0xff]  ;;  %v1344_v40 = vpack.c.bf16 %v701_v30, %v697_v29  ;;  %v737_v26 = vld [vmem:[#allocation3 + $0xbc0] sm:$0xff]  ;;  %v739_v29 = vld [vmem:[#allocation3 + $0xbd0] sm:$0xff] }
  0xb2   :  { %v743_v30 = vld [vmem:[#allocation3 + $0xbf0] sm:$0xff] }
  0xb3   :  { %1333 = vmatpush1.bf16.msra.mxu0 %v1332_v43  ;;  %v709_v43 = vld [vmem:[#allocation3 + $0xae0] sm:$0xff] }
  0xb4   :  { %1429 = vmatpush1.bf16.msra.mxu1 %v1428_v44  ;;  %1335 = vmatprep.subr.bf16.mxu0 %v1334_v46  ;;  %v1346_v44 = vpack.c.bf16 %v710_v36, %v706_v35  ;;  %v707_v46 = vld [vmem:[#allocation3 + $0xad0] sm:$0xff] }
  0xb5   :  { %1431 = vmatprep.subr.bf16.mxu1 %v1430_v47  ;;  %v711_v47 = vld [vmem:[#allocation3 + $0xaf0] sm:$0xff] }
 0x149   :  { %v371_v48 = vpop.f32.mrb[0].mxu0 }
 0x14a   :  { %v1068_v49 = vmul.f32 -1.442695, %v371_v48  ;;  %v513_v50 = vpop.f32.mrb[0].mxu1  ;;  %v373_v51 = vpop.f32.mrb[1].mxu0  ;;  %v714_v48 = vld [vmem:[#allocation3 + $0xb08] sm:$0xff] }
 0x14b   :  { %v1069_v52 = vmul.f32 -1.442695, %v373_v51  ;;  %v515_v53 = vpop.f32.mrb[1].mxu1  ;;  %v720_v51 = vld [vmem:[#allocation3 + $0xb38] sm:$0xff] }
 0x14c   :  { %1474 = vpow2.f32 %v1068_v49  ;;  %v1070_v54 = vmul.f32 -1.442695, %v515_v53  ;;  %v718_v49 = vld [vmem:[#allocation3 + $0xb28] sm:$0xff]  ;;  %v713_v53 = vld [vmem:[#allocation3 + $0xb00] sm:$0xff] }
 0x14d   :  { %1476 = vpow2.f32 %v1069_v52  ;;  %v1348_v52 = vpack.c.bf16 %v709_v43, %v705_v42 }
 0x14e   :  { %1478 = vpow2.f32 %v1070_v54  ;;  %v717_v54 = vld [vmem:[#allocation3 + $0xb20] sm:$0xff] }
 0x14f   :  { %1480 = vtanh.f32 %v513_v50  ;;  %v716_v50 = vld [vmem:[#allocation3 + $0xb18] sm:$0xff] }
 0x156   :  { %v1475_v55 = vpop.eup %1474 }
 0x157   :  { %v1477_v56 = vpop.eup %1476  ;;  %v521_v57 = vadd.f32 1.0, %v1475_v55  ;;  %v1350_v55 = vpack.c.bf16 %v718_v49, %v714_v48 }
 0x158   :  { %v527_v58 = vadd.f32 1.0, %v1477_v56  ;;  %v1479_v59 = vpop.eup %1478  ;;  %v1446_v56 = vpack.c.bf16 %v720_v51, %v716_v50 }
 0x159   :  { %1482 = vrcp.f32 %v521_v57  ;;  %v1481_v60 = vpop.eup %1480  ;;  %v534_v1 = vadd.f32 1.0, %v1479_v59  ;;  %v715_v57 = vld [vmem:[#allocation3 + $0xb10] sm:$0xff]  ;;  %v722_v59 = vld [vmem:[#allocation3 + $0xb48] sm:$0xff] }
 0x15a   :  { %1484 = vrcp.f32 %v527_v58  ;;  %v719_v58 = vld [vmem:[#allocation3 + $0xb30] sm:$0xff] }
 0x15b   :  { %1486 = vrcp.f32 %v534_v1  ;;  %v721_v1 = vld [vmem:[#allocation3 + $0xb40] sm:$0xff] }
 0x163   :  { %v1483_v62 = vpop.eup %1482 }
 0x164   :  { %v1485_v63 = vpop.eup %1484  ;;  %v539_v0 = vmul.f32 %v1483_v62, %v1481_v60  ;;  %v726_v60 = vld [vmem:[#allocation3 + $0xb68] sm:$0xff]  ;;  %v728_v62 = vld [vmem:[#allocation3 + $0xb78] sm:$0xff] }
 0x165   :  { %v538_v2 = vmul.f32 %v1485_v63, %v537_v61  ;;  %v1487_v12 = vpop.eup %1486  ;;  %v724_v61 = vld [vmem:[#allocation3 + $0xb58] sm:$0xff]  ;;  %v1352_v63 = vpack.c.bf16 %v717_v54, %v713_v53 }
 0x166   :  { %v1450_v4 = vpack.c.bf16 %v728_v62, %v724_v61 }
 0x167   :  { %v540_v3 = vadd.f32 %v539_v0, %v538_v2  ;;  %v1448_v0 = vpack.c.bf16 %v719_v58, %v715_v57  ;;  %v725_v2 = vld [vmem:[#allocation3 + $0xb60] sm:$0xff] }
 0x168   :  { %v1356_v11 = vpack.c.bf16 %v725_v2, %v721_v1 }
 0x169   :  { %544 = vst [vmem:[%s1621_s5] sm:$0xff] %v540_v3  ;;  %1488 = vtanh.f32 %v540_v3  ;;  %v1354_v3 = vpack.c.bf16 %v726_v60, %v722_v59 }
 0x170   :  { %v1075_v48 = vld [vmem:[%s1618_s2 + $0x8] sm:$0xff] }
 0x173   :  { %v1489_v13 = vpop.eup %1488 }
 0x174   :  { %v542_v19 = vmul.f32 %v1489_v13, %v1487_v12  ;;  %v1452_v12 = vpack.c.bf16 %v727_v6, %v723_v5  ;;  %v729_v13 = vld [vmem:[#allocation3 + $0xb80] sm:$0xff] }
 0x176   :  { %543 = vst [vmem:[%s1620_s4] sm:$0xff] %v542_v19  ;;  %810 = vmatmul.mubr.f32.vlgmr.msra.gmra.mrb[2].mxu0 %v542_v19  ;;  %952 = vmatmul.mubr.f32.vlgmr.msra.gmra.mrb[2].mxu1 %v542_v19  ;;  %v735_v19 = vld [vmem:[#allocation3 + $0xbb0] sm:$0xff] }
 0x177   :  { %1337 = vmatpush1.bf16.msra.mxu0 %v1336_v14  ;;  %1433 = vmatpush1.bf16.msra.mxu1 %v1432_v15  ;;  %v733_v14 = vld [vmem:[#allocation3 + $0xba0] sm:$0xff]  ;;  %v1358_v15 = vpack.c.bf16 %v734_v8, %v730_v7  ;;  %v1456_v25 = vpack.c.bf16 %v735_v19, %v731_v18 }
 0x178   :  { %1339 = vmatprep.subr.bf16.mxu0 %v1338_v20  ;;  %1435 = vmatprep.subr.bf16.mxu1 %v1434_v21  ;;  %v738_v20 = vld [vmem:[#allocation3 + $0xbc8] sm:$0xff]  ;;  %v1360_v24 = vpack.c.bf16 %v733_v14, %v729_v13 }
 0x179   :  { %880 = vmatprep.mubr.f32.mxu0 %v1533_v39  ;;  %1022 = vmatprep.mubr.f32.mxu1 %v1533_v39  ;;  %v1444_v39 = vpack.c.bf16 %v711_v47, %v707_v46  ;;  %v742_v21 = vld [vmem:[#allocation3 + $0xbe8] sm:$0xff] }
 0x17a   :  { %v1362_v16 = vpack.c.bf16 %v742_v21, %v738_v20 }
 0x17b   :  { %1341 = vmatpush1.bf16.msra.mxu0 %v1340_v27  ;;  %1437 = vmatpush1.bf16.msra.mxu1 %v1436_v28  ;;  %v1458_v27 = vpack.c.bf16 %v744_v23, %v740_v22  ;;  %v741_v28 = vld [vmem:[#allocation3 + $0xbe0] sm:$0xff] }
 0x17c   :  { %1343 = vmatprep.subr.bf16.mxu0 %v1342_v31  ;;  %1439 = vmatprep.subr.bf16.mxu1 %v1438_v32  ;;  %v1364_v31 = vpack.c.bf16 %v741_v28, %v737_v26  ;;  %v1460_v32 = vpack.c.bf16 %v743_v30, %v739_v29 }
 0x17d   :  { %v1071_v33 = vld [vmem:[%s1617_s1 + $0x8] sm:$0xff] }
 0x17f   :  { %1345 = vmatpush1.bf16.msra.mxu0 %v1344_v40  ;;  %1441 = vmatpush1.bf16.msra.mxu1 %v1440_v41 }
 0x180   :  { %1347 = vmatprep.subr.bf16.mxu0 %v1346_v44  ;;  %1443 = vmatprep.subr.bf16.mxu1 %v1442_v45 }
 0x183   :  { %1349 = vmatpush1.bf16.msra.mxu0 %v1348_v52  ;;  %1445 = vmatpush1.bf16.msra.mxu1 %v1444_v39 }
 0x184   :  { %1351 = vmatprep.subr.bf16.mxu0 %v1350_v55  ;;  %1447 = vmatprep.subr.bf16.mxu1 %v1446_v56 }
 0x187   :  { %1353 = vmatpush1.bf16.msra.mxu0 %v1352_v63  ;;  %1449 = vmatpush1.bf16.msra.mxu1 %v1448_v0 }
 0x188   :  { %1355 = vmatprep.subr.bf16.mxu0 %v1354_v3  ;;  %1451 = vmatprep.subr.bf16.mxu1 %v1450_v4 }
 0x18b   :  { %1357 = vmatpush1.bf16.msra.mxu0 %v1356_v11  ;;  %1453 = vmatpush1.bf16.msra.mxu1 %v1452_v12 }
 0x18c   :  { %1359 = vmatprep.subr.bf16.mxu0 %v1358_v15  ;;  %1455 = vmatprep.subr.bf16.mxu1 %v1454_v17 }
 0x18f   :  { %1361 = vmatpush1.bf16.msra.mxu0 %v1360_v24  ;;  %1457 = vmatpush1.bf16.msra.mxu1 %v1456_v25 }
 0x190   :  { %1363 = vmatprep.subr.bf16.mxu0 %v1362_v16  ;;  %1459 = vmatprep.subr.bf16.mxu1 %v1458_v27 }
 0x193   :  { %1365 = vmatpush1.bf16.msra.mxu0 %v1364_v31  ;;  %1461 = vmatpush1.bf16.msra.mxu1 %v1460_v32 }
 0x196   :  { %881 = vmatmul.mubr.f32.vlgmr.msra.gmra.mrb[2].mxu0 %v1071_v33  ;;  %1023 = vmatmul.mubr.f32.vlgmr.msra.gmra.mrb[2].mxu1 %v1071_v33 }
 0x269   :  { %v882_v34 = vpop.f32.mrb[2].mxu0  ;;  %v1024_v35 = vpop.f32.mrb[2].mxu1 }
 0x26a   :  { %v1072_v36 = vmul.f32 -1.442695, %v882_v34  ;;  %v884_v37 = vpop.f32.mrb[3].mxu0  ;;  %v1026_v38 = vpop.f32.mrb[3].mxu1 }
 0x26b   :  { %v1073_v40 = vmul.f32 -1.442695, %v884_v37  ;;  %v1074_v41 = vmul.f32 -1.442695, %v1026_v38 }
 0x26c   :  { %1490 = vpow2.f32 %v1072_v36 }
 0x26d   :  { %1492 = vpow2.f32 %v1073_v40 }
 0x26e   :  { %1494 = vpow2.f32 %v1074_v41 }
 0x26f   :  { %1496 = vtanh.f32 %v1024_v35 }
 0x276   :  { %v1491_v42 = vpop.eup %1490 }
 0x277   :  { %v1493_v43 = vpop.eup %1492  ;;  %v1032_v44 = vadd.f32 1.0, %v1491_v42 }
 0x278   :  { %v1038_v45 = vadd.f32 1.0, %v1493_v43  ;;  %v1495_v46 = vpop.eup %1494 }
 0x279   :  { %1498 = vrcp.f32 %v1032_v44  ;;  %v1497_v47 = vpop.eup %1496  ;;  %v1045_v52 = vadd.f32 1.0, %v1495_v46 }
 0x27a   :  { %1500 = vrcp.f32 %v1038_v45 }
 0x27b   :  { %1502 = vrcp.f32 %v1045_v52 }
 0x283   :  { %v1499_v49 = vpop.eup %1498 }
 0x284   :  { %v1501_v50 = vpop.eup %1500  ;;  %v1051_v51 = vmul.f32 %v1499_v49, %v1497_v47 }
 0x285   :  { %v1050_v39 = vmul.f32 %v1501_v50, %v1075_v48  ;;  %v1503_v54 = vpop.eup %1502 }
 0x287   :  { %v1052_v53 = vadd.f32 %v1051_v51, %v1050_v39 }
 0x289   :  { %1504 = vtanh.f32 %v1052_v53  ;;  %1077 = vst [vmem:[%s1621_s5 + $0x8] sm:$0xff] %v1052_v53 }
 0x293   :  { %v1505_v55 = vpop.eup %1504 }
 0x294   :  { %v1054_v56 = vmul.f32 %v1505_v55, %v1503_v54 }
 0x296   :  { %1076 = vst [vmem:[%s1620_s4 + $0x8] sm:$0xff] %v1054_v56 }
 0x297   :  { %1067 = vsyncpa [#allocation4], 1 }

</bundles_post_ra>
